<compile_context>
chip_gen: v5e
topology: v5e:2x2
jax: 0.10.0
libtpu: 0.0.40
codegen_flags: <defaults>
</compile_context>

<pallas_src>
import functools

import jax
import jax.numpy as jnp
import numpy as np
from jax.experimental import pallas as pl
from jax.experimental.pallas import tpu as pltpu


def _convt_phase_kernel(x_ref, w_ref, b_ref, o_ref, *, phase_specs, cin):
    # x_ref: (1, Hp, Wp, Cin)      lightly padded (NOT upsampled) input, 1 batch
    # w_ref: (K_total, Cout)       per-phase packed weights, K_total = KH*KW*Cin
    # b_ref: (1, Cout)
    # o_ref: (1, OHp, OWp, Cout)   output of ONE phase of ONE batch image
    ph = pl.program_id(1)
    _, ohp, owp, cout = o_ref.shape
    bias = b_ref[0][None, None, :].astype(jnp.float32)  # (1, 1, Cout)

    for i, (k0, taps) in enumerate(phase_specs):
        def phase_body(k0=k0, taps=taps):
            if len(taps) == 0:
                # Phase with no contributing taps: bias only.
                acc = jnp.broadcast_to(bias, (ohp, owp, cout))
            else:
                # im2col: gather every tap of this phase along the channel
                # axis, then ONE (OHp*OWp, T*Cin) x (T*Cin, Cout) MXU matmul.
                cols = [x_ref[0, a0:a0 + ohp, b0:b0 + owp, :]
                        for (a0, b0) in taps]
                patch = cols[0] if len(cols) == 1 else jnp.concatenate(cols, axis=-1)
                kk = cin * len(taps)
                wk = w_ref[k0:k0 + kk, :]                 # (T*Cin, Cout)
                acc = jnp.einsum("hwk,ko->hwo", patch, wk,
                                 preferred_element_type=jnp.float32) + bias
            o_ref[0] = acc.astype(o_ref.dtype)

        if len(phase_specs) == 1:
            phase_body()
        else:
            pl.when(ph == i)(phase_body)


def meta_conv_transpose2d(x, weight, bias, *, stride, padding, output_padding,
                          dilation, groups=1):
    """Matches F.conv_transpose2d(x, weight, bias, stride, padding,
    output_padding, groups, dilation) for groups == 1.

    x:      (N, Cin, H, W)        NCHW, like PyTorch
    weight: (Cin, Cout, KH, KW)   PyTorch ConvTranspose2d layout
    bias:   (Cout,) or None
    """
    # TODO(synk): grouped transposed conv (groups != 1) not implemented.
    assert groups == 1
    N, Cin, H, W = x.shape
    Cin_w, Cout, KH, KW = weight.shape
    assert Cin == Cin_w

    s_h, s_w = stride
    p_h, p_w = padding
    op_h, op_w = output_padding
    d_h, d_w = dilation

    OH = (H - 1) * s_h - 2 * p_h + d_h * (KH - 1) + op_h + 1
    OW = (W - 1) * s_w - 2 * p_w + d_w * (KW - 1) + op_w + 1
    assert OH > 0 and OW > 0

    # ---- static (trace-time) phase structure -------------------------------
    # Output row `oh` belongs to phase r_h = (oh + p_h) % s_h.  Only taps kh
    # with (kh*d_h) % s_h == r_h contribute, reading input row
    # ih = j + off_h(kh) for the j-th output row of that phase.
    def axis_phases(s, p, d, K, O):
        phases = []
        for r in range(s):
            o0 = (r - p) % s                               # first output index
            n = 0 if o0 >= O else (O - o0 + s - 1) // s    # valid outputs
            taps = [(k, (o0 + p - k * d) // s)
                    for k in range(K) if (k * d) % s == r]
            phases.append((o0, n, taps))
        return phases

    ph_h = axis_phases(s_h, p_h, d_h, KH, OH)
    ph_w = axis_phases(s_w, p_w, d_w, KW, OW)
    OHp = -(-OH // s_h)   # rows computed per phase (max over phases)
    OWp = -(-OW // s_w)

    offs_h = [off for (_, _, taps) in ph_h for (_, off) in taps]
    offs_w = [off for (_, _, taps) in ph_w for (_, off) in taps]
    pad_t = max(0, -min(offs_h)) if offs_h else 0
    pad_b = max(0, (max(offs_h) + OHp - 1) - (H - 1)) if offs_h else 0
    pad_l = max(0, -min(offs_w)) if offs_w else 0
    pad_r = max(0, (max(offs_w) + OWp - 1) - (W - 1)) if offs_w else 0

    # ---- cheap JAX glue: NHWC transpose + small zero border (no upsample) --
    x_nhwc = jnp.transpose(x, (0, 2, 3, 1))
    x_pad = jnp.pad(x_nhwc, ((0, 0), (pad_t, pad_b), (pad_l, pad_r), (0, 0)))
    Hp = H + pad_t + pad_b
    Wp = W + pad_l + pad_r

    # ---- pack per-phase weights into one (K_total, Cout) matrix ------------
    phase_specs = []    # (k0, ((a0, b0), ...)) — static slice offsets
    phases_meta = []    # (oh0, ow0, nh, nw)    — for wrapper interleave
    w_blocks = []
    k0 = 0
    for (oh0, nh, taps_h) in ph_h:
        for (ow0, nw, taps_w) in ph_w:
            taps = []
            for (kh, off_h) in taps_h:
                for (kw, off_w) in taps_w:
                    taps.append((off_h + pad_t, off_w + pad_l))
                    w_blocks.append(weight[:, :, kh, kw])   # (Cin, Cout)
            phase_specs.append((k0, tuple(taps)))
            phases_meta.append((oh0, ow0, nh, nw))
            k0 += Cin * len(taps)
    K_total = max(k0, 1)
    if w_blocks:
        w_packed = jnp.concatenate(w_blocks, axis=0)        # (K_total, Cout)
    else:
        w_packed = jnp.zeros((K_total, Cout), weight.dtype)
    b2 = (bias if bias is not None
          else jnp.zeros((Cout,), x.dtype)).reshape(1, Cout)

    PH = len(phase_specs)   # s_h * s_w
    kernel = functools.partial(_convt_phase_kernel,
                               phase_specs=tuple(phase_specs), cin=Cin)

    out_ph = pl.pallas_call(
        kernel,
        out_shape=jax.ShapeDtypeStruct((N * PH, OHp, OWp, Cout), x.dtype),
        grid=(N, PH),
        in_specs=[
            pl.BlockSpec((1, Hp, Wp, Cin), lambda n, ph: (n, 0, 0, 0)),
            pl.BlockSpec((K_total, Cout), lambda n, ph: (0, 0)),
            pl.BlockSpec((1, Cout), lambda n, ph: (0, 0)),
        ],
        out_specs=pl.BlockSpec((1, OHp, OWp, Cout),
                               lambda n, ph: (n * PH + ph, 0, 0, 0)),
        compiler_params=pltpu.CompilerParams(
            dimension_semantics=("parallel", "parallel")),
    )(x_pad, w_packed, b2)

    # ---- interleave phase outputs back to (N, OH, OW, Cout), then NCHW -----
    out_ph = out_ph.reshape(N, PH, OHp, OWp, Cout)
    out_nhwc = jnp.zeros((N, OH, OW, Cout), x.dtype)
    for idx, (oh0, ow0, nh, nw) in enumerate(phases_meta):
        if nh == 0 or nw == 0:
            continue
        out_nhwc = out_nhwc.at[:, oh0::s_h, ow0::s_w, :].set(
            out_ph[:, idx, :nh, :nw, :])
    return jnp.transpose(out_nhwc, (0, 3, 1, 2))


def _reference_conv_transpose2d(x, weight, bias, *, stride, padding,
                                output_padding, dilation):
    """Pure-JAX reference via conv_general_dilated (matches PyTorch)."""
    KH, KW = weight.shape[2], weight.shape[3]
    d_h, d_w = dilation
    p_h, p_w = padding
    op_h, op_w = output_padding
    w_oihw = jnp.transpose(jnp.flip(weight, axis=(2, 3)), (1, 0, 2, 3))
    pe_h = d_h * (KH - 1) - p_h
    pe_w = d_w * (KW - 1) - p_w
    out = jax.lax.conv_general_dilated(
        x, w_oihw,
        window_strides=(1, 1),
        padding=[(pe_h, pe_h + op_h), (pe_w, pe_w + op_w)],
        lhs_dilation=stride,
        rhs_dilation=dilation,
        dimension_numbers=("NCHW", "OIHW", "NCHW"),
    )
    if bias is not None:
        out = out + bias[None, :, None, None]
    return out


if __name__ == "__main__":
    # Module config: MetaConvTranspose2d(4, 8, kernel_size=3, stride=2,
    #                                    padding=1, bias=True)
    N, Cin, H, W = 2, 4, 16, 16
    Cout, KH, KW = 8, 3, 3
    stride = (2, 2)
    padding = (1, 1)
    output_padding = (0, 0)   # forward(x, output_size=None) -> default 0
    dilation = (1, 1)

    key = jax.random.PRNGKey(0)
    kx, kw, kb = jax.random.split(key, 3)
    x = jax.random.normal(kx, (N, Cin, H, W), dtype=jnp.float32)
    fan_in = Cin * KH * KW
    bound = 1.0 / np.sqrt(fan_in)
    weight = jax.random.uniform(kw, (Cin, Cout, KH, KW), jnp.float32,
                                minval=-bound, maxval=bound)
    bias = jax.random.uniform(kb, (Cout,), jnp.float32,
                              minval=-bound, maxval=bound)

    fwd = jax.jit(functools.partial(
        meta_conv_transpose2d, stride=stride, padding=padding,
        output_padding=output_padding, dilation=dilation))

    out = jax.block_until_ready(fwd(x, weight, bias))

    ref = jax.block_until_ready(_reference_conv_transpose2d(
        x, weight, bias, stride=stride, padding=padding,
        output_padding=output_padding, dilation=dilation))

    OH = (H - 1) * stride[0] - 2 * padding[0] + dilation[0] * (KH - 1) + 1
    OW = (W - 1) * stride[1] - 2 * padding[1] + dilation[1] * (KW - 1) + 1
    assert out.shape == (N, Cout, OH, OW), out.shape
    np.testing.assert_allclose(np.asarray(out), np.asarray(ref),
                               rtol=1e-5, atol=1e-5)
    print("KERNEL_OK")
</pallas_src>

<mosaic_0001>
module attributes {stable_mosaic.version = 11 : i64} {
  func.func @_convt_phase_kernel(%arg0: i32, %arg1: i32, %arg2: memref<1x17x17x4xf32, #tpu.memory_space<vmem>>, %arg3: memref<36x8xf32, #tpu.memory_space<vmem>>, %arg4: memref<1x8xf32, #tpu.memory_space<vmem>>, %arg5: memref<1x16x16x8xf32, #tpu.memory_space<vmem>>) attributes {dimension_semantics = [#tpu.dimension_semantics<parallel>, #tpu.dimension_semantics<parallel>], iteration_bounds = array<i64: 2, 4>, scalar_prefetch = 0 : i64, scratch_operands = 0 : i64, tpu.core_type = #tpu.core_type<tc>, window_params = [{transform_indices = @transform_0, window_bounds = array<i64: 1, 17, 17, 4>}, {pipeline_mode = #tpu.pipeline_mode<synchronous>, transform_indices = @transform_1, window_bounds = array<i64: 36, 8>}, {pipeline_mode = #tpu.pipeline_mode<synchronous>, transform_indices = @transform_2, window_bounds = array<i64: 1, 8>}, {transform_indices = @transform_3, window_bounds = array<i64: 1, 16, 16, 8>}]} {
    %c0 = arith.constant 0 : index
    %c0_0 = arith.constant 0 : index
    %0 = vector.load %arg4[%c0, %c0_0] : memref<1x8xf32, #tpu.memory_space<vmem>>, vector<1x8xf32>
    %1 = vector.shape_cast %0 : vector<1x8xf32> to vector<8xf32>
    %2 = vector.shape_cast %1 : vector<8xf32> to vector<1x1x8xf32>
    %c0_i32 = arith.constant 0 : i32
    %3 = arith.cmpi eq, %arg1, %c0_i32 : i32
    %4 = arith.extui %3 : i1 to i32
    %c0_i32_1 = arith.constant 0 : i32
    %5 = arith.cmpi ne, %4, %c0_i32_1 : i32
    scf.if %5 {
      %c0_5 = arith.constant 0 : index
      %c1 = arith.constant 1 : index
      %c1_6 = arith.constant 1 : index
      %c0_7 = arith.constant 0 : index
      %15 = vector.load %arg2[%c0_5, %c1, %c1_6, %c0_7] : memref<1x17x17x4xf32, #tpu.memory_space<vmem>>, vector<1x16x16x4xf32>
      %16 = vector.shape_cast %15 : vector<1x16x16x4xf32> to vector<16x16x4xf32>
      %c0_8 = arith.constant 0 : index
      %c1_9 = arith.constant 1 : index
      %c0_10 = arith.constant 0 : index
      %c0_11 = arith.constant 0 : index
      %17 = vector.load %arg2[%c0_8, %c1_9, %c0_10, %c0_11] : memref<1x17x17x4xf32, #tpu.memory_space<vmem>>, vector<1x16x16x4xf32>
      %18 = vector.shape_cast %17 : vector<1x16x16x4xf32> to vector<16x16x4xf32>
      %c0_12 = arith.constant 0 : index
      %c0_13 = arith.constant 0 : index
      %c1_14 = arith.constant 1 : index
      %c0_15 = arith.constant 0 : index
      %19 = vector.load %arg2[%c0_12, %c0_13, %c1_14, %c0_15] : memref<1x17x17x4xf32, #tpu.memory_space<vmem>>, vector<1x16x16x4xf32>
      %20 = vector.shape_cast %19 : vector<1x16x16x4xf32> to vector<16x16x4xf32>
      %c0_16 = arith.constant 0 : index
      %c0_17 = arith.constant 0 : index
      %c0_18 = arith.constant 0 : index
      %c0_19 = arith.constant 0 : index
      %21 = vector.load %arg2[%c0_16, %c0_17, %c0_18, %c0_19] : memref<1x17x17x4xf32, #tpu.memory_space<vmem>>, vector<1x16x16x4xf32>
      %22 = vector.shape_cast %21 : vector<1x16x16x4xf32> to vector<16x16x4xf32>
      %23 = tpu.concatenate %16, %18, %20, %22 in 2 : vector<16x16x4xf32>, vector<16x16x4xf32>, vector<16x16x4xf32>, vector<16x16x4xf32> -> vector<16x16x16xf32>
      %c0_20 = arith.constant 0 : index
      %c0_21 = arith.constant 0 : index
      %24 = vector.load %arg3[%c0_20, %c0_21] : memref<36x8xf32, #tpu.memory_space<vmem>>, vector<16x8xf32>
      "tpu.trace_start"() <{level = 10 : i32, message = "hwk,ko->hwo"}> : () -> ()
      %cst = arith.constant dense<0.000000e+00> : vector<16x16x8xf32>
      %25 = tpu.matmul %23, %24, %cst {dimension_numbers = #tpu.dot_dimension_numbers<[2], [0], [0, 1], [1], [0, 0, 0, 1, 1, 1], [], []>} : vector<16x16x16xf32>, vector<16x8xf32>, vector<16x16x8xf32> -> vector<16x16x8xf32>
      "tpu.trace_stop"() : () -> ()
      %26 = vector.broadcast %2 : vector<1x1x8xf32> to vector<16x16x8xf32>
      %27 = arith.addf %25, %26 : vector<16x16x8xf32>
      %c0_22 = arith.constant 0 : index
      %c0_23 = arith.constant 0 : index
      %c0_24 = arith.constant 0 : index
      %c0_25 = arith.constant 0 : index
      %28 = vector.load %arg5[%c0_22, %c0_23, %c0_24, %c0_25] : memref<1x16x16x8xf32, #tpu.memory_space<vmem>>, vector<1x16x16x8xf32>
      %29 = vector.shape_cast %28 : vector<1x16x16x8xf32> to vector<16x16x8xf32>
      %30 = vector.shape_cast %27 : vector<16x16x8xf32> to vector<1x16x16x8xf32>
      tpu.vector_store %arg5[%c0_22, %c0_23, %c0_24, %c0_25], %30 {strides = array<i32>} : memref<1x16x16x8xf32, #tpu.memory_space<vmem>>, vector<1x16x16x8xf32>,
    } else {
    }
    %c1_i32 = arith.constant 1 : i32
    %6 = arith.cmpi eq, %arg1, %c1_i32 : i32
    %7 = arith.extui %6 : i1 to i32
    %c0_i32_2 = arith.constant 0 : i32
    %8 = arith.cmpi ne, %7, %c0_i32_2 : i32
    scf.if %8 {
      %c0_5 = arith.constant 0 : index
      %c1 = arith.constant 1 : index
      %c0_6 = arith.constant 0 : index
      %c0_7 = arith.constant 0 : index
      %15 = vector.load %arg2[%c0_5, %c1, %c0_6, %c0_7] : memref<1x17x17x4xf32, #tpu.memory_space<vmem>>, vector<1x16x16x4xf32>
      %16 = vector.shape_cast %15 : vector<1x16x16x4xf32> to vector<16x16x4xf32>
      %c0_8 = arith.constant 0 : index
      %c0_9 = arith.constant 0 : index
      %c0_10 = arith.constant 0 : index
      %c0_11 = arith.constant 0 : index
      %17 = vector.load %arg2[%c0_8, %c0_9, %c0_10, %c0_11] : memref<1x17x17x4xf32, #tpu.memory_space<vmem>>, vector<1x16x16x4xf32>
      %18 = vector.shape_cast %17 : vector<1x16x16x4xf32> to vector<16x16x4xf32>
      %19 = tpu.concatenate %16, %18 in 2 : vector<16x16x4xf32>, vector<16x16x4xf32> -> vector<16x16x8xf32>
      %c16 = arith.constant 16 : index
      %c0_12 = arith.constant 0 : index
      %20 = vector.load %arg3[%c16, %c0_12] : memref<36x8xf32, #tpu.memory_space<vmem>>, vector<8x8xf32>
      "tpu.trace_start"() <{level = 10 : i32, message = "hwk,ko->hwo"}> : () -> ()
      %cst = arith.constant dense<0.000000e+00> : vector<16x16x8xf32>
      %21 = tpu.matmul %19, %20, %cst {dimension_numbers = #tpu.dot_dimension_numbers<[2], [0], [0, 1], [1], [0, 0, 0, 1, 1, 1], [], []>} : vector<16x16x8xf32>, vector<8x8xf32>, vector<16x16x8xf32> -> vector<16x16x8xf32>
      "tpu.trace_stop"() : () -> ()
      %22 = vector.broadcast %2 : vector<1x1x8xf32> to vector<16x16x8xf32>
      %23 = arith.addf %21, %22 : vector<16x16x8xf32>
      %c0_13 = arith.constant 0 : index
      %c0_14 = arith.constant 0 : index
      %c0_15 = arith.constant 0 : index
      %c0_16 = arith.constant 0 : index
      %24 = vector.load %arg5[%c0_13, %c0_14, %c0_15, %c0_16] : memref<1x16x16x8xf32, #tpu.memory_space<vmem>>, vector<1x16x16x8xf32>
      %25 = vector.shape_cast %24 : vector<1x16x16x8xf32> to vector<16x16x8xf32>
      %26 = vector.shape_cast %23 : vector<16x16x8xf32> to vector<1x16x16x8xf32>
      tpu.vector_store %arg5[%c0_13, %c0_14, %c0_15, %c0_16], %26 {strides = array<i32>} : memref<1x16x16x8xf32, #tpu.memory_space<vmem>>, vector<1x16x16x8xf32>,
    } else {
    }
    %c2_i32 = arith.constant 2 : i32
    %9 = arith.cmpi eq, %arg1, %c2_i32 : i32
    %10 = arith.extui %9 : i1 to i32
    %c0_i32_3 = arith.constant 0 : i32
    %11 = arith.cmpi ne, %10, %c0_i32_3 : i32
    scf.if %11 {
      %c0_5 = arith.constant 0 : index
      %c0_6 = arith.constant 0 : index
      %c1 = arith.constant 1 : index
      %c0_7 = arith.constant 0 : index
      %15 = vector.load %arg2[%c0_5, %c0_6, %c1, %c0_7] : memref<1x17x17x4xf32, #tpu.memory_space<vmem>>, vector<1x16x16x4xf32>
      %16 = vector.shape_cast %15 : vector<1x16x16x4xf32> to vector<16x16x4xf32>
      %c0_8 = arith.constant 0 : index
      %c0_9 = arith.constant 0 : index
      %c0_10 = arith.constant 0 : index
      %c0_11 = arith.constant 0 : index
      %17 = vector.load %arg2[%c0_8, %c0_9, %c0_10, %c0_11] : memref<1x17x17x4xf32, #tpu.memory_space<vmem>>, vector<1x16x16x4xf32>
      %18 = vector.shape_cast %17 : vector<1x16x16x4xf32> to vector<16x16x4xf32>
      %19 = tpu.concatenate %16, %18 in 2 : vector<16x16x4xf32>, vector<16x16x4xf32> -> vector<16x16x8xf32>
      %c24 = arith.constant 24 : index
      %c0_12 = arith.constant 0 : index
      %20 = vector.load %arg3[%c24, %c0_12] : memref<36x8xf32, #tpu.memory_space<vmem>>, vector<8x8xf32>
      "tpu.trace_start"() <{level = 10 : i32, message = "hwk,ko->hwo"}> : () -> ()
      %cst = arith.constant dense<0.000000e+00> : vector<16x16x8xf32>
      %21 = tpu.matmul %19, %20, %cst {dimension_numbers = #tpu.dot_dimension_numbers<[2], [0], [0, 1], [1], [0, 0, 0, 1, 1, 1], [], []>} : vector<16x16x8xf32>, vector<8x8xf32>, vector<16x16x8xf32> -> vector<16x16x8xf32>
      "tpu.trace_stop"() : () -> ()
      %22 = vector.broadcast %2 : vector<1x1x8xf32> to vector<16x16x8xf32>
      %23 = arith.addf %21, %22 : vector<16x16x8xf32>
      %c0_13 = arith.constant 0 : index
      %c0_14 = arith.constant 0 : index
      %c0_15 = arith.constant 0 : index
      %c0_16 = arith.constant 0 : index
      %24 = vector.load %arg5[%c0_13, %c0_14, %c0_15, %c0_16] : memref<1x16x16x8xf32, #tpu.memory_space<vmem>>, vector<1x16x16x8xf32>
      %25 = vector.shape_cast %24 : vector<1x16x16x8xf32> to vector<16x16x8xf32>
      %26 = vector.shape_cast %23 : vector<16x16x8xf32> to vector<1x16x16x8xf32>
      tpu.vector_store %arg5[%c0_13, %c0_14, %c0_15, %c0_16], %26 {strides = array<i32>} : memref<1x16x16x8xf32, #tpu.memory_space<vmem>>, vector<1x16x16x8xf32>,
    } else {
    }
    %c3_i32 = arith.constant 3 : i32
    %12 = arith.cmpi eq, %arg1, %c3_i32 : i32
    %13 = arith.extui %12 : i1 to i32
    %c0_i32_4 = arith.constant 0 : i32
    %14 = arith.cmpi ne, %13, %c0_i32_4 : i32
    scf.if %14 {
      %c0_5 = arith.constant 0 : index
      %c0_6 = arith.constant 0 : index
      %c0_7 = arith.constant 0 : index
      %c0_8 = arith.constant 0 : index
      %15 = vector.load %arg2[%c0_5, %c0_6, %c0_7, %c0_8] : memref<1x17x17x4xf32, #tpu.memory_space<vmem>>, vector<1x16x16x4xf32>
      %16 = vector.shape_cast %15 : vector<1x16x16x4xf32> to vector<16x16x4xf32>
      %c32 = arith.constant 32 : index
      %c0_9 = arith.constant 0 : index
      %17 = vector.load %arg3[%c32, %c0_9] : memref<36x8xf32, #tpu.memory_space<vmem>>, vector<4x8xf32>
      "tpu.trace_start"() <{level = 10 : i32, message = "hwk,ko->hwo"}> : () -> ()
      %cst = arith.constant dense<0.000000e+00> : vector<16x16x8xf32>
      %18 = tpu.matmul %16, %17, %cst {dimension_numbers = #tpu.dot_dimension_numbers<[2], [0], [0, 1], [1], [0, 0, 0, 1, 1, 1], [], []>} : vector<16x16x4xf32>, vector<4x8xf32>, vector<16x16x8xf32> -> vector<16x16x8xf32>
      "tpu.trace_stop"() : () -> ()
      %19 = vector.broadcast %2 : vector<1x1x8xf32> to vector<16x16x8xf32>
      %20 = arith.addf %18, %19 : vector<16x16x8xf32>
      %c0_10 = arith.constant 0 : index
      %c0_11 = arith.constant 0 : index
      %c0_12 = arith.constant 0 : index
      %c0_13 = arith.constant 0 : index
      %21 = vector.load %arg5[%c0_10, %c0_11, %c0_12, %c0_13] : memref<1x16x16x8xf32, #tpu.memory_space<vmem>>, vector<1x16x16x8xf32>
      %22 = vector.shape_cast %21 : vector<1x16x16x8xf32> to vector<16x16x8xf32>
      %23 = vector.shape_cast %20 : vector<16x16x8xf32> to vector<1x16x16x8xf32>
      tpu.vector_store %arg5[%c0_10, %c0_11, %c0_12, %c0_13], %23 {strides = array<i32>} : memref<1x16x16x8xf32, #tpu.memory_space<vmem>>, vector<1x16x16x8xf32>,
    } else {
    }
    return
  }
  func.func @transform_0(%arg0: i32, %arg1: i32) -> (i32, i32, i32, i32) {
    %c0_i32 = arith.constant 0 : i32
    %c0_i32_0 = arith.constant 0 : i32
    %c0_i32_1 = arith.constant 0 : i32
    %c0_i32_2 = arith.constant 0 : i32
    return %arg0, %c0_i32, %c0_i32_0, %c0_i32_1 : i32, i32, i32, i32
  }
  func.func @transform_1(%arg0: i32, %arg1: i32) -> (i32, i32) {
    %c0_i32 = arith.constant 0 : i32
    %c0_i32_0 = arith.constant 0 : i32
    %c0_i32_1 = arith.constant 0 : i32
    return %c0_i32, %c0_i32_0 : i32, i32
  }
  func.func @transform_2(%arg0: i32, %arg1: i32) -> (i32, i32) {
    %c0_i32 = arith.constant 0 : i32
    %c0_i32_0 = arith.constant 0 : i32
    %c0_i32_1 = arith.constant 0 : i32
    return %c0_i32, %c0_i32_0 : i32, i32
  }
  func.func @transform_3(%arg0: i32, %arg1: i32) -> (i32, i32, i32, i32) {
    %c4_i32 = arith.constant 4 : i32
    %0 = arith.muli %arg0, %c4_i32 : i32
    %1 = arith.addi %0, %arg1 : i32
    %c0_i32 = arith.constant 0 : i32
    %c0_i32_0 = arith.constant 0 : i32
    %c0_i32_1 = arith.constant 0 : i32
    %c0_i32_2 = arith.constant 0 : i32
    return %1, %c0_i32, %c0_i32_0, %c0_i32_1 : i32, i32, i32, i32
  }
}

</mosaic_0001>

<bundles_post_ra>
// kernel: meta_conv_transpose2d.1
= control target key start
LH: loop header
LB: loop body
LE: loop exit
PB: predicated region body
PF: predicated region fallthrough
CT: control target
= control target key end

     0   :  { %s2737_s12 = smov 0   ;;  %s2739_s13 = smov 0   ;;  %s4214_s0 = inlined_call_operand.vmem [shape: f32[2,17,17,4], index: 0, kind: input, shape index: {}]   ;;  %s4215_s1 = inlined_call_operand.vmem [shape: f32[36,8], index: 1, kind: input, shape index: {}]   ;;  %s4216_s2 = inlined_call_operand.vmem [shape: f32[1,8], index: 2, kind: input, shape index: {}]   ;;  %s4217_s3 = inlined_call_operand.vmem [shape: f32[8,16,16,8], index: 3, kind: output, shape index: {}]  }
   0x1   :  { %s2741_s14 = smov 0   ;;  %s2743_s15 = smov 0  }
   0x2   :  { %s2745_s16 = smov 0  }
   0x3 LB: > { %s22_s17 = sadd.s32 1, %s2702_s14  ;;  %s25_s18 = sadd.s32 1, %s2706_s15  ;;  %s2710_s16 = sphi %s2745_s16, %s13_s16   ;;  %s2706_s15 = sphi %s2743_s15, %s4221_s15   ;;  %s2702_s14 = sphi %s2741_s14, %s4220_s14   ;;  %s2698_s13 = sphi %s2739_s13, %s4219_s13   ;;  %s2694_s12 = sphi %s2737_s12, %s4218_s12  }
   0x4   : > { %p23_p0 = scmp.ge.s32.totalorder %s22_s17, 4  ;;  %p2374_p1 = scmp.ge.s32.totalorder %s2710_s16, 1 }
   0x5   : > { %p153_p2 = scmp.lt.s32.totalorder %s2710_s16, 9 }
   0x6   : > { %s4223_s17 = smov (%p23_p0, %s22_s17), 0  ;;  %s4225_s18 = smov (!%p23_p0, %s25_s18), %s2706_s15 }
   0x7   : > { %p154_p3 = pnand %p2374_p1, %p153_p2  ;;  %p27_p4 = scmp.ge.s32.totalorder %s4225_s18, 2 }
   0x8   : > { %p179_p5 = scmp.lt.s32.totalorder (!%p154_p3), %s2698_s13, 1  ;;  %s2376_s19 = sshll.u32 (!%p154_p3), %s2698_s13, 2 }
   0x9   : > { %s4227_s18 = smov (%p27_p4, %s4225_s18), 0  ;;  %157 = sbr.rel (%p154_p3) target bundleno = 1388 (0x56c), region = 32 }
   0xa   : > { %s185_s22 = sadd.s32 (!%p154_p3), %s2694_s12, %s2376_s19  ;;  %p2379_p7 = scmp.ne.s32.totalorder (!%p154_p3), %s2694_s12, 0 }
   0xb   : > { %p186_p6 = scmp.lt.s32.totalorder (!%p154_p3), %s185_s22, 7 }
   0xe   : > { %v2772_v0 = vld [vmem:[%s4216_s2] sm:$0x1]  ;;  %s4229_s13 = smov (!%p179_p5, %s2698_s13), 1  ;;  %s4231_s22 = smov (!%p186_p6, %s185_s22), 7 }
   0xf   : > { %s2626_s23 = smul.u32 408, %s4229_s13  ;;  %s2610_s27 = sshll.u32 %s4231_s22, 8 }
  0x10   : > { %s2783_s30 = scalar_lea.vmem %s4217_s3, %s2610_s27  ;;  %197 = sbr.rel (%p2379_p7) target bundleno = 517 (0x205), region = 36 }
  0x11   : > { %s2778_s26 = scalar_lea.vmem %s4214_s0, %s2626_s23  ;;  %s2712_s4 = smov (!%p2379_p7), 4  }
  0x12   : > { %s2713_s5 = smov (!%p2379_p7), 8   ;;  %s2714_s6 = smov (!%p2379_p7), 12  }
  0x15   : > { %v2787_v1 = vld [vmem:[%s2778_s26 + $0x48] sm:$0xff]  ;;  %v2790_v2 = vld [vmem:[%s2778_s26 + $0x30] sm:$0xff]  ;;  %v2793_v3 = vld [vmem:[%s2778_s26 + $0x18] sm:$0xff]  ;;  %vm711_vm0 = vcmask 31744   ;;  %vm744_vm1 = vcmask 64512   ;;  %vm777_vm2 = vcmask 97280  }
  0x16   : > { %367 = vrot.lane.b32.xlu2 %v2787_v1, %s2712_s4  ;;  %363 = vrot.lane.b32.xlu1 %v2790_v2, %s2712_s4  ;;  %v2802_v4 = vld [vmem:[%s2778_s26 + $0x50] sm:$0xff]  ;;  %v2805_v5 = vld [vmem:[%s2778_s26 + $0x38] sm:$0xff]  ;;  %vm815_vm3 = vcmask 130048  }
  0x17   : > { %359 = vrot.lane.b32.xlu0 %v2793_v3, %s2712_s4  ;;  %v2808_v6 = vld [vmem:[%s2778_s26 + $0x20] sm:$0xff]  ;;  %v2817_v7 = vld [vmem:[%s2778_s26 + $0x78] sm:$0xff]  ;;  %v2419_v8 = vld [vmem:[%s2778_s26 + $0x68] sm:$0xff] }
  0x18   : > { %v2418_v9 = vld [vmem:[%s2778_s26 + $0x60] sm:$0xff]  ;;  %v2826_v10 = vld [vmem:[%s2778_s26 + $0x98] sm:$0xff]  ;;  %v2829_v11 = vld [vmem:[%s2778_s26 + $0x90] sm:$0xff] }
  0x19   : > { %v2832_v12 = vld [vmem:[%s2778_s26 + $0x80] sm:$0xff]  ;;  %v2842_v14 = vld [vmem:[%s2778_s26 + $0xb0] sm:$0xff]  ;;  %v2845_v15 = vld [vmem:[%s2778_s26 + $0xa8] sm:$0xff] }
  0x1a   : > { %v2426_v13 = vld [vmem:[%s2778_s26 + $0xc0] sm:$0xff]  ;;  %v2428_v17 = vld [vmem:[%s2778_s26 + $0xd8] sm:$0xff]  ;;  %v2427_v18 = vld [vmem:[%s2778_s26 + $0xc8] sm:$0xff] }
  0x1b   : > { %v2853_v16 = vld [vmem:[%s2778_s26 + $0xe0] sm:$0xff]  ;;  %v2436_v20 = vld [vmem:[%s2778_s26 + $0x138] sm:$0xff]  ;;  %v2866_v21 = vld [vmem:[%s2778_s26 + $0xf0] sm:$0xff] }
  0x1c   : > { %v2862_v19 = vld [vmem:[%s2778_s26 + $0xc1] sm:$0xff]  ;;  %v2897_v27 = vld [vmem:[%s2778_s26 + $0xc9] sm:$0xff]  ;;  %v2927_v35 = vld [vmem:[%s2778_s26 + $0xd9] sm:$0xff] }
  0x1d   : > { %v2874_v22 = vld [vmem:[%s2778_s26 + $0x120] sm:$0xff]  ;;  %v2905_v29 = vld [vmem:[%s2778_s26 + $0x128] sm:$0xff]  ;;  %v2916_v31 = vld [vmem:[%s2778_s26 + $0x150] sm:$0xff] }
  0x1e   : > { %369 = vrot.lane.b32.xlu2 %v2802_v4, %s2712_s4  ;;  %365 = vrot.lane.b32.xlu1 %v2805_v5, %s2712_s4  ;;  %v2877_v23 = vld [vmem:[%s2778_s26 + $0x121] sm:$0xff]  ;;  %v2908_v30 = vld [vmem:[%s2778_s26 + $0x129] sm:$0xff] }
  0x1f   : > { %361 = vrot.lane.b32.xlu0 %v2808_v6, %s2712_s4  ;;  %v2885_v24 = vld [vmem:[%s2778_s26 + $0x140] sm:$0xff]  ;;  %v272_v32 = vld [vmem:[%s2778_s26 + $0x69] sm:$0xff]  ;;  %v2949_v41 = vld [vmem:[%s2778_s26 + $0xf8] sm:$0xff] }
  0x20   : > { %v2888_v25 = vld [vmem:[%s2778_s26 + $0x61] sm:$0xff]  ;;  %v264_v33 = vld [vmem:[%s2778_s26 + $0x9] sm:$0xff]  ;;  %v2937_v38 = vld [vmem:[%s2778_s26 + $0x139] sm:$0xff] }
  0x21   : > { %v263_v26 = vld [vmem:[%s2778_s26 + $0x1] sm:$0xff]  ;;  %v2946_v40 = vld [vmem:[%s2778_s26 + $0x79] sm:$0xff]  ;;  %v2382_v43 = vld [vmem:[%s2778_s26 + $0x31] sm:$0xff] }
  0x22   : > { %v295_v28 = vld [vmem:[%s2778_s26] sm:$0xff]  ;;  %v296_v36 = vld [vmem:[%s2778_s26 + $0x8] sm:$0xff]  ;;  %v2967_v49 = vld [vmem:[%s2778_s26 + $0x158] sm:$0xff] }
  0x23   : > { %v265_v42 = vld [vmem:[%s2778_s26 + $0x19] sm:$0xff]  ;;  %v2381_v50 = vld [vmem:[%s2778_s26 + $0x21] sm:$0xff] }
  0x24   : > { %v2984_v55 = vld [vmem:[%s2778_s26 + $0x141] sm:$0xff] }
  0x25   : > { %v2987_v56 = vld [vmem:[%s2778_s26 + $0xe1] sm:$0xff] }
  0x26   : > { %375 = vrot.lane.b32.xlu2 %v2817_v7, %s2712_s4  ;;  %373 = vrot.lane.b32.xlu1 %v2419_v8, %s2712_s4  ;;  %v274_v61 = vld [vmem:[%s2778_s26 + $0x81] sm:$0xff] }
  0x27   : > { %371 = vrot.lane.b32.xlu0 %v2418_v9, %s2712_s4  ;;  %v811_v62 = vld [vmem:[%s4215_s1 + $0x8] sm:$0xff] }
  0x28   : > { %2612 = vmatpush.msra.mxu2 %v811_v62  ;;  %2613 = vmatpush.msra.mxu3 %v811_v62 }
  0x29   : > { %926 = vmatpush.msra.mxu0 %v811_v62  ;;  %2611 = vmatpush.msra.mxu1 %v811_v62 }
  0x2e   : > { %381 = vrot.lane.b32.xlu2 %v2826_v10, %s2712_s4  ;;  %379 = vrot.lane.b32.xlu1 %v2829_v11, %s2712_s4 }
  0x2f   : > { %377 = vrot.lane.b32.xlu0 %v2832_v12, %s2712_s4 }
  0x36   : > { %387 = vrot.lane.b32.xlu2 %v2426_v13, %s2712_s4  ;;  %385 = vrot.lane.b32.xlu1 %v2842_v14, %s2712_s4 }
  0x37   : > { %383 = vrot.lane.b32.xlu0 %v2845_v15, %s2712_s4 }
  0x3e   : > { %393 = vrot.lane.b32.xlu2 %v2853_v16, %s2712_s4  ;;  %391 = vrot.lane.b32.xlu1 %v2428_v17, %s2712_s4 }
  0x3f   : > { %389 = vrot.lane.b32.xlu0 %v2427_v18, %s2712_s4 }
  0x46   : > { %519 = vrot.lane.b32.xlu2 %v2862_v19, %s2713_s5  ;;  %407 = vrot.lane.b32.xlu1 %v2436_v20, %s2712_s4 }
  0x47   : > { %395 = vrot.lane.b32.xlu0 %v2866_v21, %s2712_s4 }
  0x4e   : > { %663 = vrot.lane.b32.xlu2 %v2874_v22, %s2714_s6  ;;  %647 = vrot.lane.b32.xlu1 %v2426_v13, %s2714_s6  ;;  %v3019_v13 = vld [vmem:[%s2778_s26 + $0x168] sm:$0xff] }
  0x4f   : > { %535 = vrot.lane.b32.xlu0 %v2877_v23, %s2713_s5 }
  0x56   : > { %409 = vrot.lane.b32.xlu2 %v2885_v24, %s2712_s4  ;;  %503 = vrot.lane.b32.xlu1 %v2888_v25, %s2713_s5 }
  0x57   : > { %487 = vrot.lane.b32.xlu0 %v263_v26, %s2713_s5  ;;  %v3038_v26 = vld [vmem:[%s2778_s26 + $0xf1] sm:$0xff] }
  0x5e   : > { %521 = vrot.lane.b32.xlu2 %v2897_v27, %s2713_s5  ;;  %631 = vrot.lane.b32.xlu1 %v2418_v9, %s2714_s6 }
  0x5f   : > { %615 = vrot.lane.b32.xlu0 %v295_v28, %s2714_s6 }
  0x66   : > { %665 = vrot.lane.b32.xlu2 %v2905_v29, %s2714_s6  ;;  %649 = vrot.lane.b32.xlu1 %v2427_v18, %s2714_s6 }
  0x67   : > { %537 = vrot.lane.b32.xlu0 %v2908_v30, %s2713_s5 }
  0x6e   : > { %411 = vrot.lane.b32.xlu2 %v2916_v31, %s2712_s4  ;;  %505 = vrot.lane.b32.xlu1 %v272_v32, %s2713_s5 }
  0x6f   : > { %489 = vrot.lane.b32.xlu0 %v264_v33, %s2713_s5 }
  0x70   : > { %v2924_v34 = vpop.permute.xlu2 %367 }
  0x76   : > { %523 = vrot.lane.b32.xlu2 %v2927_v35, %s2713_s5  ;;  %633 = vrot.lane.b32.xlu1 %v2419_v8, %s2714_s6  ;;  %v810_v8 = vld [vmem:[%s4215_s1] sm:$0xff] }
  0x77   : > { %617 = vrot.lane.b32.xlu0 %v296_v36, %s2714_s6  ;;  %2615 = vmatpush.msra.mxu2 %v810_v8 }
  0x78   : > { %v2934_v37 = vpop.permute.xlu2 %369  ;;  %2616 = vmatpush.msra.mxu3 %v810_v8  ;;  %927 = vmatpush.msra.mxu0 %v810_v8 }
  0x79   : > { %2614 = vmatpush.msra.mxu1 %v810_v8 }
  0x7e   : > { %667 = vrot.lane.b32.xlu2 %v2436_v20, %s2714_s6  ;;  %651 = vrot.lane.b32.xlu1 %v2428_v17, %s2714_s6 }
  0x7f   : > { %539 = vrot.lane.b32.xlu0 %v2937_v38, %s2713_s5 }
  0x80   : > { %v2943_v39 = vpop.permute.xlu2 %375 }
  0x86   : > { %397 = vrot.lane.b32.xlu2 %v2949_v41, %s2712_s4  ;;  %507 = vrot.lane.b32.xlu1 %v2946_v40, %s2713_s5 }
  0x87   : > { %491 = vrot.lane.b32.xlu0 %v265_v42, %s2713_s5 }
  0x88   : > { %v2958_v44 = vpop.permute.xlu2 %381  ;;  %v364_v45 = vpop.permute.xlu1 %363 }
  0x89   : > { %v2961_v46 = vsel %vm711_vm0, %v2382_v43, %v364_v45  ;;  %v360_v47 = vpop.permute.xlu0 %359  ;;  %v3056_v45 = vld [vmem:[%s2778_s26 + $0x170] sm:$0xff] }
  0x8a   : > { %v2964_v48 = vsel %vm711_vm0, %v265_v42, %v360_v47  ;;  %v3059_v47 = vld [vmem:[%s2778_s26 + $0x110] sm:$0xff] }
  0x8e   : > { %635 = vrot.lane.b32.xlu2 %v2817_v7, %s2714_s6  ;;  %619 = vrot.lane.b32.xlu1 %v2793_v3, %s2714_s6 }
  0x8f   : > { %413 = vrot.lane.b32.xlu0 %v2967_v49, %s2712_s4 }
  0x90   : > { %v2976_v51 = vpop.permute.xlu2 %387  ;;  %v2978_v52 = vpop.permute.xlu1 %365 }
  0x91   : > { %v362_v53 = vpop.permute.xlu0 %361 }
  0x92   : > { %v2981_v54 = vsel %vm711_vm0, %v2381_v50, %v362_v53 }
  0x96   : > { %653 = vrot.lane.b32.xlu2 %v2853_v16, %s2714_s6  ;;  %541 = vrot.lane.b32.xlu1 %v2984_v55, %s2713_s5  ;;  %v3022_v16 = vld [vmem:[%s2778_s26 + $0x108] sm:$0xff] }
  0x97   : > { %525 = vrot.lane.b32.xlu0 %v2987_v56, %s2713_s5 }
  0x98   : > { %v2995_v57 = vpop.permute.xlu2 %393  ;;  %v374_v58 = vpop.permute.xlu1 %373 }
  0x99   : > { %v2998_v59 = vsel %vm711_vm0, %v272_v32, %v374_v58  ;;  %v3000_v60 = vpop.permute.xlu0 %371 }
  0x9e   : > { %509 = vrot.lane.b32.xlu2 %v274_v61, %s2713_s5  ;;  %493 = vrot.lane.b32.xlu1 %v2381_v50, %s2713_s5 }
  0x9f   : > { %669 = vrot.lane.b32.xlu0 %v2885_v24, %s2714_s6  ;;  %v3035_v24 = vld [vmem:[%s2778_s26 + $0x151] sm:$0xff] }
  0xa0   : > { %v520_v63 = vpop.permute.xlu2 %519  ;;  %v3010_v3 = vpop.permute.xlu1 %379 }
  0xa1   : > { %v378_v7 = vpop.permute.xlu0 %377 }
  0xa2   : > { %v3016_v9 = vsel %vm711_vm0, %v274_v61, %v378_v7  ;;  %v3080_v7 = vld [vmem:[%s2778_s26 + $0xf9] sm:$0xff] }
  0xa6   : > { %621 = vrot.lane.b32.xlu2 %v2808_v6, %s2714_s6  ;;  %415 = vrot.lane.b32.xlu1 %v3019_v13, %s2712_s4 }
  0xa7   : > { %399 = vrot.lane.b32.xlu0 %v3022_v16, %s2712_s4 }
  0xa8   : > { %v664_v17 = vpop.permute.xlu2 %663  ;;  %v3030_v18 = vpop.permute.xlu1 %385 }
  0xa9   : > { %v3032_v20 = vpop.permute.xlu0 %383 }
  0xae   : > { %543 = vrot.lane.b32.xlu2 %v3035_v24, %s2713_s5  ;;  %527 = vrot.lane.b32.xlu1 %v3038_v26, %s2713_s5 }
  0xaf   : > { %637 = vrot.lane.b32.xlu0 %v2832_v12, %s2714_s6 }
  0xb0   : > { %v410_v6 = vpop.permute.xlu2 %409  ;;  %v392_v28 = vpop.permute.xlu1 %391 }
  0xb1   : > { %v3046_v32 = vpop.permute.xlu0 %389  ;;  %v728_v12 = vsel %vm711_vm0, %v2927_v35, %v392_v28 }
  0xb2   : > { %v761_v35 = vsel %vm744_vm1, %v728_v12, %v520_v63 }
  0xb6   : > { %495 = vrot.lane.b32.xlu2 %v2382_v43, %s2713_s5  ;;  %671 = vrot.lane.b32.xlu1 %v2916_v31, %s2714_s6  ;;  %v3064_v43 = vld [vmem:[%s2778_s26 + $0x91] sm:$0xff] }
  0xb7   : > { %655 = vrot.lane.b32.xlu0 %v2866_v21, %s2714_s6 }
  0xb8   : > { %v522_v33 = vpop.permute.xlu2 %521  ;;  %v408_v36 = vpop.permute.xlu1 %407 }
  0xb9   : > { %v3053_v42 = vpop.permute.xlu0 %395  ;;  %v736_v50 = vsel %vm711_vm0, %v2937_v38, %v408_v36 }
  0xbe   : > { %417 = vrot.lane.b32.xlu2 %v3056_v45, %s2712_s4  ;;  %401 = vrot.lane.b32.xlu1 %v3059_v47, %s2712_s4 }
  0xbf   : > { %511 = vrot.lane.b32.xlu0 %v3064_v43, %s2713_s5 }
  0xc0   : > { %v666_v21 = vpop.permute.xlu2 %665  ;;  %v648_v31 = vpop.permute.xlu1 %647 }
  0xc1   : > { %v536_v53 = vpop.permute.xlu0 %535  ;;  %v794_v58 = vsel %vm777_vm2, %v761_v35, %v648_v31 }
  0xc2   : > { %v769_v61 = vsel %vm744_vm1, %v736_v50, %v536_v53  ;;  %2460 = vmatmul.msk.f32.vlgmr.msra.gmra.mxu2 %vm815_vm3, %v794_v58  ;;  %v737_v58 = vsel %vm711_vm0, %v2984_v55, %v410_v6 }
  0xc3   : > { %v802_v62 = vsel %vm777_vm2, %v769_v61, %v664_v17  ;;  %v3092_v17 = vld [vmem:[%s2778_s26 + $0x159] sm:$0xff] }
  0xc4   : > { %2468 = vmatmul.msk.f32.vlgmr.msra.gmra.mxu3 %vm815_vm3, %v802_v62 }
  0xc6   : > { %529 = vrot.lane.b32.xlu2 %v3080_v7, %s2713_s5  ;;  %639 = vrot.lane.b32.xlu1 %v2829_v11, %s2714_s6  ;;  %v720_v11 = vsel %vm711_vm0, %v2946_v40, %v2943_v39  ;;  %v3111_v39 = vld [vmem:[%s2778_s26 + $0x99] sm:$0xff] }
  0xc7   : > { %623 = vrot.lane.b32.xlu0 %v2790_v2, %s2714_s6  ;;  %v3114_v40 = vld [vmem:[%s2778_s26 + $0x39] sm:$0xff] }
  0xc8   : > { %v3089_v38 = vpop.permute.xlu2 %411  ;;  %v504_v63 = vpop.permute.xlu1 %503 }
  0xc9   : > { %v488_v8 = vpop.permute.xlu0 %487  ;;  %v753_v2 = vsel %vm744_vm1, %v720_v11, %v504_v63  ;;  %v3140_v63 = vld [vmem:[%s2778_s26 + $0x169] sm:$0xff] }
  0xca   : > { %v745_v12 = vsel %vm744_vm1, %v2964_v48, %v488_v8  ;;  %v3143_v8 = vld [vmem:[%s2778_s26 + $0x109] sm:$0xff] }
  0xce   : > { %673 = vrot.lane.b32.xlu2 %v2967_v49, %s2714_s6  ;;  %657 = vrot.lane.b32.xlu1 %v2949_v41, %s2714_s6  ;;  %v729_v41 = vsel %vm711_vm0, %v2987_v56, %v2995_v57  ;;  %v2442_v57 = vld [vmem:[%s2778_s26 + $0x180] sm:$0xff] }
  0xcf   : > { %545 = vrot.lane.b32.xlu0 %v3092_v17, %s2713_s5  ;;  %v762_v48 = vsel %vm744_vm1, %v729_v41, %v522_v33  ;;  %v738_v41 = vsel %vm711_vm0, %v3035_v24, %v3089_v38  ;;  %v722_v24 = vsel %vm711_vm0, %v3064_v43, %v3010_v3 }
  0xd0   : > { %v524_v28 = vpop.permute.xlu2 %523  ;;  %v632_v36 = vpop.permute.xlu1 %631 }
  0xd1   : > { %v616_v31 = vpop.permute.xlu0 %615  ;;  %v786_v49 = vsel %vm777_vm2, %v753_v2, %v632_v36 }
  0xd2   : > { %v778_v35 = vsel %vm777_vm2, %v745_v12, %v616_v31  ;;  %2452 = vmatmul.msk.f32.vlgmr.msra.gmra.mxu1 %vm815_vm3, %v786_v49  ;;  %v3163_v31 = vld [vmem:[%s2778_s26 + $0xa9] sm:$0xff] }
  0xd3   : > { %2444 = vmatmul.msk.f32.vlgmr.msra.gmra.mxu0 %vm815_vm3, %v778_v35 }
  0xd6   : > { %403 = vrot.lane.b32.xlu2 %v2874_v22, %s2712_s4  ;;  %513 = vrot.lane.b32.xlu1 %v3111_v39, %s2713_s5 }
  0xd7   : > { %497 = vrot.lane.b32.xlu0 %v3114_v40, %s2713_s5 }
  0xd8   : > { %v668_v50 = vpop.permute.xlu2 %667  ;;  %v650_v53 = vpop.permute.xlu1 %649 }
  0xd9   : > { %v538_v22 = vpop.permute.xlu0 %537  ;;  %v795_v61 = vsel %vm777_vm2, %v762_v48, %v650_v53 }
  0xda   : > { %v770_v62 = vsel %vm744_vm1, %v737_v58, %v538_v22  ;;  %2461 = vmatmul.msk.f32.gmra.mxu2 %vm815_vm3, %v795_v61  ;;  %v3199_v61 = vld [vmem:[%s2778_s26 + $0x111] sm:$0xff] }
  0xdb   : > { %v803_v56 = vsel %vm777_vm2, %v770_v62, %v666_v21 }
  0xdc   : > { %2469 = vmatmul.msk.f32.gmra.mxu3 %vm815_vm3, %v803_v56 }
  0xde   : > { %641 = vrot.lane.b32.xlu2 %v2826_v10, %s2714_s6  ;;  %625 = vrot.lane.b32.xlu1 %v2805_v5, %s2714_s6 }
  0xdf   : > { %419 = vrot.lane.b32.xlu0 %v2442_v57, %s2712_s4  ;;  %v3212_v57 = vld [vmem:[%s2778_s26 + $0x51] sm:$0xff] }
  0xe0   : > { %v398_v55 = vpop.permute.xlu2 %397  ;;  %v506_v6 = vpop.permute.xlu1 %505 }
  0xe1   : > { %v490_v33 = vpop.permute.xlu0 %489  ;;  %v754_v5 = vsel %vm744_vm1, %v3016_v9, %v506_v6  ;;  %v731_v6 = vsel %vm711_vm0, %v3080_v7, %v398_v55 }
  0xe2   : > { %v746_v11 = vsel %vm744_vm1, %v2981_v54, %v490_v33  ;;  %v730_v54 = vsel %vm711_vm0, %v3038_v26, %v3053_v42 }
  0xe3   : > { %v763_v9 = vsel %vm744_vm1, %v730_v54, %v524_v28 }
  0xe6   : > { %659 = vrot.lane.b32.xlu2 %v3022_v16, %s2714_s6  ;;  %547 = vrot.lane.b32.xlu1 %v3140_v63, %s2713_s5  ;;  %v3160_v16 = vld [vmem:[%s2778_s26 + $0x49] sm:$0xff] }
  0xe7   : > { %531 = vrot.lane.b32.xlu0 %v3143_v8, %s2713_s5 }
  0xe8   : > { %v636_v10 = vpop.permute.xlu2 %635  ;;  %v634_v21 = vpop.permute.xlu1 %633 }
  0xe9   : > { %v618_v2 = vpop.permute.xlu0 %617  ;;  %v787_v36 = vsel %vm777_vm2, %v754_v5, %v634_v21  ;;  %v3226_v21 = vld [vmem:[%s2778_s26 + $0xb1] sm:$0xff] }
  0xea   : > { %v779_v12 = vsel %vm777_vm2, %v746_v11, %v618_v2  ;;  %2453 = vmatmul.msk.f32.gmra.mxu1 %vm815_vm3, %v787_v36 }
  0xeb   : > { %2445 = vmatmul.msk.f32.gmra.mxu0 %vm815_vm3, %v779_v12 }
  0xee   : > { %515 = vrot.lane.b32.xlu2 %v3163_v31, %s2713_s5  ;;  %499 = vrot.lane.b32.xlu1 %v3160_v16, %s2713_s5 }
  0xef   : > { %675 = vrot.lane.b32.xlu0 %v3019_v13, %s2714_s6  ;;  %v2443_v13 = vld [vmem:[%s2778_s26 + $0x188] sm:$0xff] }
  0xf0   : > { %v654_v49 = vpop.permute.xlu2 %653  ;;  %v652_v35 = vpop.permute.xlu1 %651 }
  0xf1   : > { %v540_v48 = vpop.permute.xlu0 %539  ;;  %v796_v53 = vsel %vm777_vm2, %v763_v9, %v652_v35 }
  0xf2   : > { %v771_v58 = vsel %vm744_vm1, %v738_v41, %v540_v48  ;;  %2462 = vmatmul.msk.f32.gmra.mxu2 %vm815_vm3, %v796_v53 }
  0xf3   : > { %v804_v26 = vsel %vm777_vm2, %v771_v58, %v668_v50 }
  0xf4   : > { %2470 = vmatmul.msk.f32.gmra.mxu3 %vm815_vm3, %v804_v26 }
  0xf6   : > { %627 = vrot.lane.b32.xlu2 %v2787_v1, %s2714_s6  ;;  %421 = vrot.lane.b32.xlu1 %v2443_v13, %s2712_s4  ;;  %v3196_v1 = vld [vmem:[%s2778_s26 + $0x171] sm:$0xff] }
  0xf7   : > { %405 = vrot.lane.b32.xlu0 %v2905_v29, %s2712_s4 }
  0xf8   : > { %v510_v42 = vpop.permute.xlu2 %509  ;;  %v508_v38 = vpop.permute.xlu1 %507 }
  0xf9   : > { %v755_v28 = vsel %vm744_vm1, %v722_v24, %v508_v38  ;;  %v492_v50 = vpop.permute.xlu0 %491 }
  0xfa   : > { %v788_v22 = vsel %vm777_vm2, %v755_v28, %v636_v10  ;;  %v747_v29 = vsel %vm744_vm1, %v2961_v46, %v492_v50  ;;  %v716_v28 = vsel %vm711_vm0, %v3160_v16, %v2924_v34 }
  0xfb   : > { %2454 = vmatmul.msk.f32.gmra.mxu1 %vm815_vm3, %v788_v22 }
  0xfe   : > { %549 = vrot.lane.b32.xlu2 %v3196_v1, %s2713_s5  ;;  %533 = vrot.lane.b32.xlu1 %v3199_v61, %s2713_s5 }
  0xff   : > { %643 = vrot.lane.b32.xlu0 %v2845_v15, %s2714_s6 }
 0x100   : > { %v622_v3 = vpop.permute.xlu2 %621  ;;  %v620_v43 = vpop.permute.xlu1 %619 }
 0x101   : > { %v414_v62 = vpop.permute.xlu0 %413  ;;  %v780_v56 = vsel %vm777_vm2, %v747_v29, %v620_v43 }
 0x102   : > { %2446 = vmatmul.msk.f32.gmra.mxu0 %vm815_vm3, %v780_v56 }
 0x106   : > { %501 = vrot.lane.b32.xlu2 %v3212_v57, %s2713_s5  ;;  %677 = vrot.lane.b32.xlu1 %v3056_v45, %s2714_s6  ;;  %v715_v45 = vsel %vm711_vm0, %v3114_v40, %v2978_v52 }
 0x107   : > { %661 = vrot.lane.b32.xlu0 %v3059_v47, %s2714_s6  ;;  %v739_v47 = vsel %vm711_vm0, %v3092_v17, %v414_v62  ;;  %v723_v17 = vsel %vm711_vm0, %v3111_v39, %v2958_v44 }
 0x108   : > { %v544_v15 = vpop.permute.xlu2 %543  ;;  %v542_v46 = vpop.permute.xlu1 %541  ;;  %v756_v9 = vsel %vm744_vm1, %v723_v17, %v510_v42 }
 0x109   : > { %v526_v33 = vpop.permute.xlu0 %525  ;;  %v772_v55 = vsel %vm744_vm1, %v739_v47, %v542_v46  ;;  %v725_v47 = vsel %vm711_vm0, %v3226_v21, %v3030_v18  ;;  %v717_v18 = vsel %vm711_vm0, %v3212_v57, %v2934_v37 }
 0x10a   : > { %v764_v5 = vsel %vm744_vm1, %v731_v6, %v526_v33  ;;  %v3282_v33 = vperm.slane %v2772_v0, 0 }
 0x10b   : > { %v797_v10 = vsel %vm777_vm2, %v764_v5, %v654_v49 }
 0x10c   : > { %2463 = vmatmul.msk.f32.gmra.mxu2 %vm815_vm3, %v797_v10 }
 0x10e   : > { %629 = vrot.lane.b32.xlu1 %v2802_v4, %s2714_s6  ;;  %645 = vrot.lane.b32.xlu2 %v2842_v14, %s2714_s6 }
 0x10f   : > { %517 = vrot.lane.b32.xlu0 %v3226_v21, %s2713_s5 }
 0x110   : > { %v494_v7 = vpop.permute.xlu1 %493  ;;  %v496_v4 = vpop.permute.xlu2 %495 }
 0x111   : > { %v748_v11 = vsel %vm744_vm1, %v715_v45, %v494_v7  ;;  %v670_v2 = vpop.permute.xlu0 %669  ;;  %v749_v29 = vsel %vm744_vm1, %v716_v28, %v496_v4 }
 0x112   : > { %v805_v36 = vsel %vm777_vm2, %v772_v55, %v670_v2  ;;  %v781_v14 = vsel %vm777_vm2, %v748_v11, %v622_v3 }
 0x113   : > { %2471 = vmatmul.msk.f32.gmra.mxu3 %vm815_vm3, %v805_v36  ;;  %2447 = vmatmul.msk.f32.gmra.mxu0 %vm815_vm3, %v781_v14 }
 0x118   : > { %v416_v12 = vpop.permute.xlu1 %415  ;;  %v418_v40 = vpop.permute.xlu2 %417 }
 0x119   : > { %v400_v52 = vpop.permute.xlu0 %399  ;;  %v740_v41 = vsel %vm711_vm0, %v3140_v63, %v416_v12 }
 0x11a   : > { %v732_v53 = vsel %vm711_vm0, %v3143_v8, %v400_v52  ;;  %v773_v26 = vsel %vm744_vm1, %v740_v41, %v544_v15  ;;  %v724_v8 = vsel %vm711_vm0, %v3163_v31, %v3032_v20  ;;  %v741_v31 = vsel %vm711_vm0, %v3196_v1, %v418_v40 }
 0x120   : > { %v528_v54 = vpop.permute.xlu1 %527  ;;  %v530_v48 = vpop.permute.xlu2 %529 }
 0x121   : > { %v638_v49 = vpop.permute.xlu0 %637  ;;  %v765_v44 = vsel %vm744_vm1, %v732_v53, %v528_v54  ;;  %v2410_v53 = vld [vmem:[%s2778_s26 + $0x181] sm:$0xff] }
 0x122   : > { %v789_v35 = vsel %vm777_vm2, %v756_v9, %v638_v49 }
 0x123   : > { %2455 = vmatmul.msk.f32.gmra.mxu1 %vm815_vm3, %v789_v35 }
 0x128   : > { %v672_v58 = vpop.permute.xlu1 %671  ;;  %v674_v42 = vpop.permute.xlu2 %673 }
 0x129   : > { %v656_v39 = vpop.permute.xlu0 %655  ;;  %v806_v13 = vsel %vm777_vm2, %v773_v26, %v672_v58 }
 0x12a   : > { %v798_v24 = vsel %vm777_vm2, %v765_v44, %v656_v39  ;;  %2472 = vmatmul.msk.f32.gmra.mxu3 %vm815_vm3, %v806_v13  ;;  %v718_v13 = vsel %vm711_vm0, %v2888_v25, %v3000_v60 }
 0x12b   : > { %2464 = vmatmul.msk.f32.gmra.mxu2 %vm815_vm3, %v798_v24 }
 0x130   : > { %v402_v63 = vpop.permute.xlu1 %401  ;;  %v404_v62 = vpop.permute.xlu2 %403 }
 0x131   : > { %v512_v38 = vpop.permute.xlu0 %511  ;;  %v733_v20 = vsel %vm711_vm0, %v3199_v61, %v402_v63  ;;  %v734_v57 = vsel %vm711_vm0, %v2877_v23, %v404_v62 }
 0x132   : > { %v757_v50 = vsel %vm744_vm1, %v724_v8, %v512_v38  ;;  %v766_v16 = vsel %vm744_vm1, %v733_v20, %v530_v48 }
 0x138   : > { %v640_v22 = vpop.permute.xlu1 %639  ;;  %v642_v5 = vpop.permute.xlu2 %641 }
 0x139   : > { %v624_v3 = vpop.permute.xlu0 %623  ;;  %v790_v43 = vsel %vm777_vm2, %v757_v50, %v640_v22 }
 0x13a   : > { %v782_v56 = vsel %vm777_vm2, %v749_v29, %v624_v3  ;;  %2456 = vmatmul.msk.f32.gmra.mxu1 %vm815_vm3, %v790_v43 }
 0x13b   : > { %2448 = vmatmul.msk.f32.gmra.mxu0 %vm815_vm3, %v782_v56  ;;  %v726_v56 = vsel %vm711_vm0, %v2862_v19, %v2976_v51 }
 0x140   : > { %v658_v34 = vpop.permute.xlu1 %657  ;;  %v660_v36 = vpop.permute.xlu2 %659 }
 0x141   : > { %v546_v15 = vpop.permute.xlu0 %545  ;;  %v799_v46 = vsel %vm777_vm2, %v766_v16, %v658_v34 }
 0x142   : > { %v774_v6 = vsel %vm744_vm1, %v741_v31, %v546_v15  ;;  %2465 = vmatmul.msk.f32.gmra.mxu2 %vm815_vm3, %v799_v46  ;;  %v2411_v15 = vld [vmem:[%s2778_s26 + $0x189] sm:$0xff] }
 0x143   : > { %v807_v61 = vsel %vm777_vm2, %v774_v6, %v674_v42 }
 0x144   : > { %2473 = vmatmul.msk.f32.gmra.mxu3 %vm815_vm3, %v807_v61 }
 0x145   : > { %v977_v10 = vpop.f32.mrf.mxu2 }
 0x146   : > { %v978_v45 = vadd.f32 %v977_v10, %v3282_v33 }
 0x147   : > { %v1001_v1 = vpop.f32.mrf.mxu3 }
 0x148   : > { %1041 = vst.msk [vmem:[%s2783_s30 + $0x80] sm:$0xff] %vm744_vm1, %v978_v45  ;;  %v1002_v7 = vadd.f32 %v1001_v1, %v3282_v33  ;;  %v514_v55 = vpop.permute.xlu1 %513  ;;  %v516_v37 = vpop.permute.xlu2 %515 }
 0x149   : > { %v758_v11 = vsel %vm744_vm1, %v725_v47, %v514_v55  ;;  %v498_v2 = vpop.permute.xlu0 %497  ;;  %v759_v20 = vsel %vm744_vm1, %v726_v56, %v516_v37 }
 0x14a   : > { %1049 = vst.msk [vmem:[%s2783_s30 + $0xc0] sm:$0xff] %vm744_vm1, %v1002_v7  ;;  %v791_v4 = vsel %vm777_vm2, %v758_v11, %v642_v5  ;;  %v750_v52 = vsel %vm744_vm1, %v717_v18, %v498_v2  ;;  %v727_v18 = vsel %vm711_vm0, %v2897_v27, %v3046_v32 }
 0x14b   : > { %2457 = vmatmul.msk.f32.gmra.mxu1 %vm815_vm3, %v791_v4 }
 0x14f   : > { %v953_v14 = vpop.f32.mrf.mxu1 }
 0x150   : > { %v929_v21 = vpop.f32.mrf.mxu0  ;;  %v954_v12 = vadd.f32 %v953_v14, %v3282_v33  ;;  %v626_v17 = vpop.permute.xlu1 %625 }
 0x151   : > { %v930_v40 = vadd.f32 %v929_v21, %v3282_v33  ;;  %v420_v54 = vpop.permute.xlu0 %419  ;;  %v783_v9 = vsel %vm777_vm2, %v750_v52, %v626_v17  ;;  %v628_v38 = vpop.permute.xlu2 %627 }
 0x152   : > { %1033 = vst.msk [vmem:[%s2783_s30 + $0x40] sm:$0xff] %vm744_vm1, %v954_v12  ;;  %2449 = vmatmul.msk.f32.gmra.mxu0 %vm815_vm3, %v783_v9  ;;  %v742_v39 = vsel %vm711_vm0, %v2410_v53, %v420_v54 }
 0x153   : > { %1025 = vst.msk [vmem:[%s2783_s30] sm:$0xff] %vm744_vm1, %v930_v40 }
 0x158   : > { %v548_v49 = vpop.permute.xlu1 %547 }
 0x159   : > { %v532_v35 = vpop.permute.xlu0 %531  ;;  %v775_v24 = vsel %vm744_vm1, %v742_v39, %v548_v49  ;;  %v550_v62 = vpop.permute.xlu2 %549 }
 0x15a   : > { %v767_v41 = vsel %vm744_vm1, %v734_v57, %v532_v35 }
 0x15b   : > { %v800_v48 = vsel %vm777_vm2, %v767_v41, %v660_v36 }
 0x15c   : > { %2466 = vmatmul.msk.f32.gmra.mxu2 %vm815_vm3, %v800_v48 }
 0x15d   : > { %v980_v58 = vpop.f32.mrf.mxu2 }
 0x15e   : > { %v981_v26 = vadd.f32 %v980_v58, %v3282_v33 }
 0x15f   : > { %v1004_v44 = vpop.f32.mrf.mxu3 }
 0x160   : > { %1042 = vst.msk [vmem:[%s2783_s30 + $0x88] sm:$0xff] %vm744_vm1, %v981_v26  ;;  %v1005_v23 = vadd.f32 %v1004_v44, %v3282_v33  ;;  %v500_v42 = vpop.permute.xlu1 %499 }
 0x161   : > { %v676_v63 = vpop.permute.xlu0 %675  ;;  %v751_v8 = vsel %vm744_vm1, %v718_v13, %v500_v42  ;;  %v502_v10 = vpop.permute.xlu2 %501 }
 0x162   : > { %1050 = vst.msk [vmem:[%s2783_s30 + $0xc8] sm:$0xff] %vm744_vm1, %v1005_v23  ;;  %v808_v28 = vsel %vm777_vm2, %v775_v24, %v676_v63  ;;  %v784_v50 = vsel %vm777_vm2, %v751_v8, %v628_v38  ;;  %v752_v21 = vsel %vm744_vm1, %v2998_v59, %v502_v10 }
 0x163   : > { %2474 = vmatmul.msk.f32.gmra.mxu3 %vm815_vm3, %v808_v28  ;;  %2450 = vmatmul.msk.f32.gmra.mxu0 %vm815_vm3, %v784_v50 }
 0x167   : > { %v956_v25 = vpop.f32.mrf.mxu1 }
 0x168   : > { %v932_v60 = vpop.f32.mrf.mxu0  ;;  %v957_v22 = vadd.f32 %v956_v25, %v3282_v33  ;;  %v422_v3 = vpop.permute.xlu1 %421 }
 0x169   : > { %v933_v29 = vadd.f32 %v932_v60, %v3282_v33  ;;  %v406_v43 = vpop.permute.xlu0 %405  ;;  %v743_v6 = vsel %vm711_vm0, %v2411_v15, %v422_v3  ;;  %v646_v14 = vpop.permute.xlu2 %645 }
 0x16a   : > { %1034 = vst.msk [vmem:[%s2783_s30 + $0x48] sm:$0xff] %vm744_vm1, %v957_v22  ;;  %v735_v19 = vsel %vm711_vm0, %v2908_v30, %v406_v43  ;;  %v776_v11 = vsel %vm744_vm1, %v743_v6, %v550_v62 }
 0x16b   : > { %1026 = vst.msk [vmem:[%s2783_s30 + $0x8] sm:$0xff] %vm744_vm1, %v933_v29 }
 0x170   : > { %v534_v34 = vpop.permute.xlu1 %533 }
 0x171   : > { %v644_v16 = vpop.permute.xlu0 %643  ;;  %v768_v1 = vsel %vm744_vm1, %v735_v19, %v534_v34 }
 0x172   : > { %v792_v31 = vsel %vm777_vm2, %v759_v20, %v644_v16 }
 0x173   : > { %2458 = vmatmul.msk.f32.gmra.mxu1 %vm815_vm3, %v792_v31 }
 0x175   : > { %v983_v46 = vpop.f32.mrf.mxu2 }
 0x176   : > { %v984_v61 = vadd.f32 %v983_v46, %v3282_v33 }
 0x177   : > { %v1007_v5 = vpop.f32.mrf.mxu3 }
 0x178   : > { %1043 = vst.msk [vmem:[%s2783_s30 + $0x90] sm:$0xff] %vm744_vm1, %v984_v61  ;;  %v1008_v51 = vadd.f32 %v1007_v5, %v3282_v33  ;;  %v959_v45 = vpop.f32.mrf.mxu1  ;;  %v678_v47 = vpop.permute.xlu1 %677 }
 0x179   : > { %v662_v7 = vpop.permute.xlu0 %661  ;;  %v960_v55 = vadd.f32 %v959_v45, %v3282_v33  ;;  %v809_v30 = vsel %vm777_vm2, %v776_v11, %v678_v47 }
 0x17a   : > { %1051 = vst.msk [vmem:[%s2783_s30 + $0xd0] sm:$0xff] %vm744_vm1, %v1008_v51  ;;  %v801_v2 = vsel %vm777_vm2, %v768_v1, %v662_v7  ;;  %2475 = vmatmul.msk.f32.gmra.mxu3 %vm815_vm3, %v809_v30 }
 0x17b   : > { %1035 = vst.msk [vmem:[%s2783_s30 + $0x50] sm:$0xff] %vm744_vm1, %v960_v55  ;;  %2467 = vmatmul.msk.f32.gmra.mxu2 %vm815_vm3, %v801_v2 }
 0x17f   : > { %v935_v4 = vpop.f32.mrf.mxu0 }
 0x180   : > { %v936_v36 = vadd.f32 %v935_v4, %v3282_v33  ;;  %v630_v12 = vpop.permute.xlu1 %629 }
 0x181   : > { %v518_v52 = vpop.permute.xlu0 %517  ;;  %v785_v17 = vsel %vm777_vm2, %v752_v21, %v630_v12 }
 0x182   : > { %1027 = vst.msk [vmem:[%s2783_s30 + $0x10] sm:$0xff] %vm744_vm1, %v936_v36  ;;  %v760_v40 = vsel %vm744_vm1, %v727_v18, %v518_v52  ;;  %2451 = vmatmul.msk.f32.gmra.mxu0 %vm815_vm3, %v785_v17 }
 0x183   : > { %v793_v54 = vsel %vm777_vm2, %v760_v40, %v646_v14 }
 0x184   : > { %2459 = vmatmul.msk.f32.gmra.mxu1 %vm815_vm3, %v793_v54 }
 0x18f   : > { %v986_v27 = vpop.f32.mrf.mxu2 }
 0x190   : > { %v987_v59 = vadd.f32 %v986_v27, %v3282_v33  ;;  %v938_v32 = vpop.f32.mrf.mxu0 }
 0x191   : > { %v939_v9 = vadd.f32 %v938_v32, %v3282_v33 }
 0x192   : > { %1044 = vst.msk [vmem:[%s2783_s30 + $0x98] sm:$0xff] %vm744_vm1, %v987_v59 }
 0x193   : > { %1028 = vst.msk [vmem:[%s2783_s30 + $0x18] sm:$0xff] %vm744_vm1, %v939_v9 }
 0x196   : > { %v1010_v37 = vpop.f32.mrf.mxu3 }
 0x197   : > { %v1011_v57 = vadd.f32 %v1010_v37, %v3282_v33 }
 0x199   : > { %1052 = vst.msk [vmem:[%s2783_s30 + $0xd8] sm:$0xff] %vm744_vm1, %v1011_v57 }
 0x1a0   : > { %v962_v49 = vpop.f32.mrf.mxu1 }
 0x1a1   : > { %v963_v35 = vadd.f32 %v962_v49, %v3282_v33 }
 0x1a3   : > { %1036 = vst.msk [vmem:[%s2783_s30 + $0x58] sm:$0xff] %vm744_vm1, %v963_v35 }
 0x1ad   : > { %v1013_v41 = vpop.f32.mrf.mxu3 }
 0x1ae   : > { %v989_v48 = vpop.f32.mrf.mxu2  ;;  %v1014_v53 = vadd.f32 %v1013_v41, %v3282_v33 }
 0x1af   : > { %v990_v58 = vadd.f32 %v989_v48, %v3282_v33 }
 0x1b0   : > { %1053 = vst.msk [vmem:[%s2783_s30 + $0xe0] sm:$0xff] %vm744_vm1, %v1014_v53 }
 0x1b1   : > { %1045 = vst.msk [vmem:[%s2783_s30 + $0xa0] sm:$0xff] %vm744_vm1, %v990_v58 }
 0x1b7   : > { %v965_v26 = vpop.f32.mrf.mxu1 }
 0x1b8   : > { %v941_v44 = vpop.f32.mrf.mxu0  ;;  %v966_v39 = vadd.f32 %v965_v26, %v3282_v33 }
 0x1b9   : > { %v942_v23 = vadd.f32 %v941_v44, %v3282_v33 }
 0x1ba   : > { %1037 = vst.msk [vmem:[%s2783_s30 + $0x60] sm:$0xff] %vm744_vm1, %v966_v39 }
 0x1bb   : > { %1029 = vst.msk [vmem:[%s2783_s30 + $0x20] sm:$0xff] %vm744_vm1, %v942_v23 }
 0x1c5   : > { %v992_v13 = vpop.f32.mrf.mxu2 }
 0x1c6   : > { %v993_v24 = vadd.f32 %v992_v13, %v3282_v33 }
 0x1c7   : > { %v1016_v42 = vpop.f32.mrf.mxu3 }
 0x1c8   : > { %1046 = vst.msk [vmem:[%s2783_s30 + $0xa8] sm:$0xff] %vm744_vm1, %v993_v24  ;;  %v1017_v63 = vadd.f32 %v1016_v42, %v3282_v33  ;;  %v968_v38 = vpop.f32.mrf.mxu1 }
 0x1c9   : > { %v969_v8 = vadd.f32 %v968_v38, %v3282_v33 }
 0x1ca   : > { %1054 = vst.msk [vmem:[%s2783_s30 + $0xe8] sm:$0xff] %vm744_vm1, %v1017_v63 }
 0x1cb   : > { %1038 = vst.msk [vmem:[%s2783_s30 + $0x68] sm:$0xff] %vm744_vm1, %v969_v8 }
 0x1cf   : > { %v944_v28 = vpop.f32.mrf.mxu0 }
 0x1d0   : > { %v945_v50 = vadd.f32 %v944_v28, %v3282_v33 }
 0x1d2   : > { %1030 = vst.msk [vmem:[%s2783_s30 + $0x28] sm:$0xff] %vm744_vm1, %v945_v50 }
 0x1df   : > { %v995_v25 = vpop.f32.mrf.mxu2 }
 0x1e0   : > { %v996_v60 = vadd.f32 %v995_v25, %v3282_v33  ;;  %v947_v22 = vpop.f32.mrf.mxu0 }
 0x1e1   : > { %v948_v29 = vadd.f32 %v947_v22, %v3282_v33 }
 0x1e2   : > { %1047 = vst.msk [vmem:[%s2783_s30 + $0xb0] sm:$0xff] %vm744_vm1, %v996_v60 }
 0x1e3   : > { %1031 = vst.msk [vmem:[%s2783_s30 + $0x30] sm:$0xff] %vm744_vm1, %v948_v29 }
 0x1e6   : > { %v1019_v3 = vpop.f32.mrf.mxu3 }
 0x1e7   : > { %v1020_v43 = vadd.f32 %v1019_v3, %v3282_v33 }
 0x1e9   : > { %1055 = vst.msk [vmem:[%s2783_s30 + $0xf0] sm:$0xff] %vm744_vm1, %v1020_v43 }
 0x1f0   : > { %v971_v62 = vpop.f32.mrf.mxu1 }
 0x1f1   : > { %v972_v56 = vadd.f32 %v971_v62, %v3282_v33 }
 0x1f3   : > { %1039 = vst.msk [vmem:[%s2783_s30 + $0x70] sm:$0xff] %vm744_vm1, %v972_v56 }
 0x1fd   : > { %v1022_v34 = vpop.f32.mrf.mxu3 }
 0x1fe   : > { %v998_v20 = vpop.f32.mrf.mxu2  ;;  %v1023_v31 = vadd.f32 %v1022_v34, %v3282_v33 }
 0x1ff   : > { %v999_v16 = vadd.f32 %v998_v20, %v3282_v33  ;;  %v950_v15 = vpop.f32.mrf.mxu0 }
 0x200   : > { %v951_v46 = vadd.f32 %v950_v15, %v3282_v33  ;;  %1056 = vst.msk [vmem:[%s2783_s30 + $0xf8] sm:$0xff] %vm744_vm1, %v1023_v31 }
 0x201   : > { %1048 = vst.msk [vmem:[%s2783_s30 + $0xb8] sm:$0xff] %vm744_vm1, %v999_v16  ;;  %v974_v6 = vpop.f32.mrf.mxu1 }
 0x202   : > { %v975_v61 = vadd.f32 %v974_v6, %v3282_v33  ;;  %1032 = vst.msk [vmem:[%s2783_s30 + $0x38] sm:$0xff] %vm744_vm1, %v951_v46 }
 0x204   : > { %1040 = vst.msk [vmem:[%s2783_s30 + $0x78] sm:$0xff] %vm744_vm1, %v975_v61 }
 0x205 PF: > { %p2476_p8 = scmp.ne.s32.totalorder %s2694_s12, 1 }
 0x206   : > { %s2715_s11 = smov (!%p2476_p8), 4  }
 0x207   : > { %1060 = sbr.rel (%p2476_p8) target bundleno = 852 (0x354), region = 40 }
 0x20c   : > { %v3438_v5 = vld [vmem:[%s2778_s26 + $0xc0] sm:$0xff]  ;;  %v3445_v33 = vld [vmem:[%s2778_s26 + $0xc8] sm:$0xff]  ;;  %v1112_v7 = vld [vmem:[%s2778_s26 + $0xd8] sm:$0xff]  ;;  %vm1254_vm4 = vcmask 31744   ;;  %vm1291_vm5 = vcmask 64512  }
 0x20d   : > { %v1094_v10 = vld [vmem:[%s2778_s26] sm:$0xff]  ;;  %1190 = vrot.lane.b32.xlu0 %v3438_v5, %s2715_s11  ;;  %1192 = vrot.lane.b32.xlu2 %v3445_v33, %s2715_s11  ;;  %v3460_v45 = vld [vmem:[%s2778_s26 + $0x128] sm:$0xff] }
 0x20e   : > { %1158 = vrot.lane.b32.xlu1 %v1094_v10, %s2715_s11  ;;  %v3450_v19 = vld [vmem:[%s2778_s26 + $0x120] sm:$0xff]  ;;  %v1095_v1 = vld [vmem:[%s2778_s26 + $0x8] sm:$0xff]  ;;  %v3474_v55 = vld [vmem:[%s2778_s26 + $0x138] sm:$0xff] }
 0x20f   : > { %v3453_v51 = vld [vmem:[%s2778_s26 + $0x60] sm:$0xff]  ;;  %v3466_v47 = vld [vmem:[%s2778_s26 + $0x68] sm:$0xff]  ;;  %v1096_v11 = vld [vmem:[%s2778_s26 + $0x18] sm:$0xff] }
 0x210   : > { %v1104_v2 = vld [vmem:[%s2778_s26 + $0x78] sm:$0xff]  ;;  %v1113_v30 = vld [vmem:[%s2778_s26 + $0xe0] sm:$0xff]  ;;  %v1114_v18 = vld [vmem:[%s2778_s26 + $0xf0] sm:$0xff] }
 0x211   : > { %v3484_v4 = vld [vmem:[%s2778_s26 + $0x140] sm:$0xff]  ;;  %v3502_v21 = vld [vmem:[%s2778_s26 + $0x150] sm:$0xff]  ;;  %v3517_v40 = vld [vmem:[%s2778_s26 + $0xf8] sm:$0xff] }
 0x212   : > { %v3490_v36 = vld [vmem:[%s2778_s26 + $0x20] sm:$0xff]  ;;  %v3507_v12 = vld [vmem:[%s2778_s26 + $0x30] sm:$0xff]  ;;  %v3522_v17 = vld [vmem:[%s2778_s26 + $0x158] sm:$0xff] }
 0x213   : > { %v3495_v14 = vld [vmem:[%s2778_s26 + $0x80] sm:$0xff]  ;;  %v3510_v52 = vld [vmem:[%s2778_s26 + $0x90] sm:$0xff]  ;;  %v3525_v54 = vld [vmem:[%s2778_s26 + $0x38] sm:$0xff] }
 0x214   : > { %v3532_v27 = vld [vmem:[%s2778_s26 + $0x98] sm:$0xff]  ;;  %v3537_v59 = vld [vmem:[%s2778_s26 + $0x108] sm:$0xff]  ;;  %v3555_v57 = vld [vmem:[%s2778_s26 + $0x110] sm:$0xff] }
 0x215   : > { %1206 = vrot.lane.b32.xlu0 %v3450_v19, %s2715_s11  ;;  %1208 = vrot.lane.b32.xlu2 %v3460_v45, %s2715_s11  ;;  %v3540_v32 = vld [vmem:[%s2778_s26 + $0x168] sm:$0xff]  ;;  %v3562_v49 = vld [vmem:[%s2778_s26 + $0x170] sm:$0xff] }
 0x216   : > { %1174 = vrot.lane.b32.xlu1 %v3453_v51, %s2715_s11  ;;  %v3547_v9 = vld [vmem:[%s2778_s26 + $0x48] sm:$0xff]  ;;  %v3567_v35 = vld [vmem:[%s2778_s26 + $0x50] sm:$0xff] }
 0x217   : > { %v3552_v37 = vld [vmem:[%s2778_s26 + $0xa8] sm:$0xff]  ;;  %v3570_v41 = vld [vmem:[%s2778_s26 + $0xb0] sm:$0xff] }
 0x218   : > { %v1287_v48 = vld [vmem:[%s4215_s1 + $0x10] sm:$0xff] }
 0x219   : > { %1403 = vmatpush.msra.mxu0 %v1287_v48  ;;  %2618 = vmatpush.msra.mxu2 %v1287_v48 }
 0x21a   : > { %2617 = vmatpush.msra.mxu1 %v1287_v48  ;;  %2619 = vmatpush.msra.mxu3 %v1287_v48  ;;  %v2508_v48 = vld [vmem:[%s2778_s26 + $0x188] sm:$0xff] }
 0x21d   : > { %1160 = vrot.lane.b32.xlu0 %v1095_v1, %s2715_s11  ;;  %1194 = vrot.lane.b32.xlu2 %v1112_v7, %s2715_s11 }
 0x21e   : > { %1176 = vrot.lane.b32.xlu1 %v3466_v47, %s2715_s11 }
 0x225   : > { %1210 = vrot.lane.b32.xlu0 %v3474_v55, %s2715_s11  ;;  %1178 = vrot.lane.b32.xlu2 %v1104_v2, %s2715_s11 }
 0x226   : > { %1162 = vrot.lane.b32.xlu1 %v1096_v11, %s2715_s11 }
 0x22d   : > { %1196 = vrot.lane.b32.xlu0 %v1113_v30, %s2715_s11  ;;  %1164 = vrot.lane.b32.xlu2 %v3490_v36, %s2715_s11 }
 0x22e   : > { %1212 = vrot.lane.b32.xlu1 %v3484_v4, %s2715_s11 }
 0x235   : > { %1180 = vrot.lane.b32.xlu0 %v3495_v14, %s2715_s11  ;;  %1214 = vrot.lane.b32.xlu2 %v3502_v21, %s2715_s11 }
 0x236   : > { %1198 = vrot.lane.b32.xlu1 %v1114_v18, %s2715_s11 }
 0x23d   : > { %1166 = vrot.lane.b32.xlu0 %v3507_v12, %s2715_s11  ;;  %1200 = vrot.lane.b32.xlu2 %v3517_v40, %s2715_s11 }
 0x23e   : > { %1182 = vrot.lane.b32.xlu1 %v3510_v52, %s2715_s11 }
 0x245   : > { %1216 = vrot.lane.b32.xlu0 %v3522_v17, %s2715_s11  ;;  %1184 = vrot.lane.b32.xlu2 %v3532_v27, %s2715_s11 }
 0x246   : > { %1168 = vrot.lane.b32.xlu1 %v3525_v54, %s2715_s11 }
 0x24d   : > { %1202 = vrot.lane.b32.xlu0 %v3537_v59, %s2715_s11  ;;  %1170 = vrot.lane.b32.xlu2 %v3547_v9, %s2715_s11 }
 0x24e   : > { %1218 = vrot.lane.b32.xlu1 %v3540_v32, %s2715_s11 }
 0x255   : > { %1186 = vrot.lane.b32.xlu0 %v3552_v37, %s2715_s11  ;;  %1220 = vrot.lane.b32.xlu2 %v3562_v49, %s2715_s11 }
 0x256   : > { %1204 = vrot.lane.b32.xlu1 %v3555_v57, %s2715_s11 }
 0x25d   : > { %1172 = vrot.lane.b32.xlu0 %v3567_v35, %s2715_s11 }
 0x25e   : > { %1188 = vrot.lane.b32.xlu1 %v3570_v41, %s2715_s11 }
 0x267   : > { %v1193_v53 = vpop.permute.xlu2 %1192 }
 0x268   : > { %v1272_v38 = vsel %vm1254_vm4, %v1113_v30, %v1193_v53 }
 0x26f   : > { %v1209_v58 = vpop.permute.xlu2 %1208 }
 0x270   : > { %v1280_v3 = vsel %vm1254_vm4, %v3484_v4, %v1209_v58 }
 0x277   : > { %v1195_v26 = vpop.permute.xlu2 %1194 }
 0x278   : > { %v1273_v60 = vsel %vm1254_vm4, %v1114_v18, %v1195_v26 }
 0x27f   : > { %v1191_v44 = vpop.permute.xlu0 %1190  ;;  %v1179_v28 = vpop.permute.xlu2 %1178 }
 0x280   : > { %v1159_v39 = vpop.permute.xlu1 %1158  ;;  %v1271_v13 = vsel %vm1254_vm4, %v1112_v7, %v1191_v44  ;;  %v1265_v62 = vsel %vm1254_vm4, %v3510_v52, %v1179_v28 }
 0x281   : > { %v1255_v23 = vsel %vm1254_vm4, %v1096_v11, %v1159_v39  ;;  %2525 = vmatmul.msk.f32.vlgmr.msra.gmra.mxu2 %vm1291_vm5, %v1271_v13 }
 0x282   : > { %2509 = vmatmul.msk.f32.vlgmr.msra.gmra.mxu0 %vm1291_vm5, %v1255_v23 }
 0x287   : > { %v1207_v24 = vpop.permute.xlu0 %1206  ;;  %v1165_v43 = vpop.permute.xlu2 %1164 }
 0x288   : > { %v1175_v42 = vpop.permute.xlu1 %1174  ;;  %v1279_v8 = vsel %vm1254_vm4, %v3474_v55, %v1207_v24  ;;  %v1258_v15 = vsel %vm1254_vm4, %v3525_v54, %v1165_v43 }
 0x289   : > { %v1263_v63 = vsel %vm1254_vm4, %v1104_v2, %v1175_v42  ;;  %2526 = vmatmul.msk.f32.gmra.mxu2 %vm1291_vm5, %v1272_v38  ;;  %2533 = vmatmul.msk.f32.vlgmr.msra.gmra.mxu3 %vm1291_vm5, %v1279_v8 }
 0x28a   : > { %2517 = vmatmul.msk.f32.vlgmr.msra.gmra.mxu1 %vm1291_vm5, %v1263_v63 }
 0x28f   : > { %v1161_v50 = vpop.permute.xlu0 %1160  ;;  %v1215_v31 = vpop.permute.xlu2 %1214 }
 0x290   : > { %v1177_v25 = vpop.permute.xlu1 %1176  ;;  %v1256_v22 = vsel %vm1254_vm4, %v3490_v36, %v1161_v50  ;;  %v1283_v11 = vsel %vm1254_vm4, %v3540_v32, %v1215_v31  ;;  %v2507_v32 = vld [vmem:[%s2778_s26 + $0x180] sm:$0xff] }
 0x291   : > { %v1264_v29 = vsel %vm1254_vm4, %v3495_v14, %v1177_v25  ;;  %2510 = vmatmul.msk.f32.gmra.mxu0 %vm1291_vm5, %v1256_v22  ;;  %2534 = vmatmul.msk.f32.gmra.mxu3 %vm1291_vm5, %v1280_v3 }
 0x292   : > { %2518 = vmatmul.msk.f32.gmra.mxu1 %vm1291_vm5, %v1264_v29  ;;  %2527 = vmatmul.msk.f32.gmra.mxu2 %vm1291_vm5, %v1273_v60 }
 0x297   : > { %v1211_v56 = vpop.permute.xlu0 %1210  ;;  %v1201_v1 = vpop.permute.xlu2 %1200 }
 0x298   : > { %v1163_v20 = vpop.permute.xlu1 %1162  ;;  %v1281_v16 = vsel %vm1254_vm4, %v3502_v21, %v1211_v56  ;;  %v1276_v14 = vsel %vm1254_vm4, %v3555_v57, %v1201_v1 }
 0x299   : > { %v1257_v34 = vsel %vm1254_vm4, %v3507_v12, %v1163_v20  ;;  %2535 = vmatmul.msk.f32.gmra.mxu3 %vm1291_vm5, %v1281_v16 }
 0x29a   : > { %2511 = vmatmul.msk.f32.gmra.mxu0 %vm1291_vm5, %v1257_v34  ;;  %2519 = vmatmul.msk.f32.gmra.mxu1 %vm1291_vm5, %v1265_v62 }
 0x29f   : > { %v1197_v46 = vpop.permute.xlu0 %1196  ;;  %v1185_v12 = vpop.permute.xlu2 %1184 }
 0x2a0   : > { %v1213_v6 = vpop.permute.xlu1 %1212  ;;  %v1274_v61 = vsel %vm1254_vm4, %v3517_v40, %v1197_v46 }
 0x2a1   : > { %v1282_v10 = vsel %vm1254_vm4, %v3522_v17, %v1213_v6  ;;  %2528 = vmatmul.msk.f32.gmra.mxu2 %vm1291_vm5, %v1274_v61  ;;  %v1268_v17 = vsel %vm1254_vm4, %v3570_v41, %v1185_v12 }
 0x2a2   : > { %2512 = vmatmul.msk.f32.gmra.mxu0 %vm1291_vm5, %v1258_v15  ;;  %2536 = vmatmul.msk.f32.gmra.mxu3 %vm1291_vm5, %v1282_v10 }
 0x2a7   : > { %v1181_v7 = vpop.permute.xlu0 %1180 }
 0x2a8   : > { %v1199_v55 = vpop.permute.xlu1 %1198  ;;  %v1266_v2 = vsel %vm1254_vm4, %v3532_v27, %v1181_v7 }
 0x2a9   : > { %v1275_v30 = vsel %vm1254_vm4, %v3537_v59, %v1199_v55  ;;  %2520 = vmatmul.msk.f32.gmra.mxu1 %vm1291_vm5, %v1266_v2  ;;  %v1171_v59 = vpop.permute.xlu2 %1170 }
 0x2aa   : > { %2529 = vmatmul.msk.f32.gmra.mxu2 %vm1291_vm5, %v1275_v30  ;;  %2537 = vmatmul.msk.f32.gmra.mxu3 %vm1291_vm5, %v1283_v11  ;;  %v1261_v57 = vsel %vm1254_vm4, %v3453_v51, %v1171_v59 }
 0x2af   : > { %v1167_v4 = vpop.permute.xlu0 %1166 }
 0x2b0   : > { %v1183_v36 = vpop.permute.xlu1 %1182  ;;  %v1259_v18 = vsel %vm1254_vm4, %v3547_v9, %v1167_v4 }
 0x2b1   : > { %v1267_v21 = vsel %vm1254_vm4, %v3552_v37, %v1183_v36  ;;  %2513 = vmatmul.msk.f32.gmra.mxu0 %vm1291_vm5, %v1259_v18 }
 0x2b2   : > { %2521 = vmatmul.msk.f32.gmra.mxu1 %vm1291_vm5, %v1267_v21  ;;  %2530 = vmatmul.msk.f32.gmra.mxu2 %vm1291_vm5, %v1276_v14 }
 0x2b7   : > { %v1217_v52 = vpop.permute.xlu0 %1216 }
 0x2b8   : > { %v1169_v40 = vpop.permute.xlu1 %1168  ;;  %v1284_v27 = vsel %vm1254_vm4, %v3562_v49, %v1217_v52  ;;  %v1221_v49 = vpop.permute.xlu2 %1220 }
 0x2b9   : > { %v1260_v54 = vsel %vm1254_vm4, %v3567_v35, %v1169_v40  ;;  %2538 = vmatmul.msk.f32.gmra.mxu3 %vm1291_vm5, %v1284_v27  ;;  %v1286_v26 = vsel %vm1254_vm4, %v2508_v48, %v1221_v49 }
 0x2ba   : > { %2514 = vmatmul.msk.f32.gmra.mxu0 %vm1291_vm5, %v1260_v54  ;;  %2522 = vmatmul.msk.f32.gmra.mxu1 %vm1291_vm5, %v1268_v17 }
 0x2bf   : > { %v1203_v9 = vpop.permute.xlu0 %1202 }
 0x2c0   : > { %v1219_v37 = vpop.permute.xlu1 %1218  ;;  %v1277_v35 = vsel %vm1254_vm4, %v3450_v19, %v1203_v9 }
 0x2c1   : > { %v1285_v41 = vsel %vm1254_vm4, %v2507_v32, %v1219_v37  ;;  %2531 = vmatmul.msk.f32.gmra.mxu2 %vm1291_vm5, %v1277_v35 }
 0x2c2   : > { %2539 = vmatmul.msk.f32.gmra.mxu3 %vm1291_vm5, %v1285_v41  ;;  %2515 = vmatmul.msk.f32.gmra.mxu0 %vm1291_vm5, %v1261_v57 }
 0x2c7   : > { %v1187_v53 = vpop.permute.xlu0 %1186 }
 0x2c8   : > { %v1205_v58 = vpop.permute.xlu1 %1204  ;;  %v1269_v51 = vsel %vm1254_vm4, %v3438_v5, %v1187_v53  ;;  %v3671_v5 = vperm.slane %v2772_v0, 0 }
 0x2c9   : > { %v1278_v19 = vsel %vm1254_vm4, %v3460_v45, %v1205_v58  ;;  %2523 = vmatmul.msk.f32.gmra.mxu1 %vm1291_vm5, %v1269_v51 }
 0x2ca   : > { %2532 = vmatmul.msk.f32.gmra.mxu2 %vm1291_vm5, %v1278_v19  ;;  %2540 = vmatmul.msk.f32.gmra.mxu3 %vm1291_vm5, %v1286_v26 }
 0x2cf   : > { %v1173_v44 = vpop.permute.xlu0 %1172 }
 0x2d0   : > { %v1189_v39 = vpop.permute.xlu1 %1188  ;;  %v1262_v23 = vsel %vm1254_vm4, %v3466_v47, %v1173_v44 }
 0x2d1   : > { %v1270_v13 = vsel %vm1254_vm4, %v3445_v33, %v1189_v39  ;;  %2516 = vmatmul.msk.f32.gmra.mxu0 %vm1291_vm5, %v1262_v23 }
 0x2d2   : > { %2524 = vmatmul.msk.f32.gmra.mxu1 %vm1291_vm5, %v1270_v13 }
 0x2ff   : > { %v1405_v45 = vpop.f32.mrf.mxu0 }
 0x300   : > { %v1406_v24 = vadd.f32 %v1405_v45, %v3671_v5 }
 0x302   : > { %1501 = vst.msk [vmem:[%s2783_s30] sm:$0xff] %vm1291_vm5, %v1406_v24 }
 0x304   : > { %v1453_v42 = vpop.f32.mrf.mxu2 }
 0x305   : > { %v1454_v47 = vadd.f32 %v1453_v42, %v3671_v5 }
 0x307   : > { %v1429_v33 = vpop.f32.mrf.mxu1  ;;  %1517 = vst.msk [vmem:[%s2783_s30 + $0x80] sm:$0xff] %vm1291_vm5, %v1454_v47 }
 0x308   : > { %v1430_v63 = vadd.f32 %v1429_v33, %v3671_v5 }
 0x30a   : > { %1509 = vst.msk [vmem:[%s2783_s30 + $0x40] sm:$0xff] %vm1291_vm5, %v1430_v63 }
 0x30c   : > { %v1456_v38 = vpop.f32.mrf.mxu2  ;;  %v1477_v28 = vpop.f32.mrf.mxu3 }
 0x30d   : > { %v1457_v8 = vadd.f32 %v1456_v38, %v3671_v5  ;;  %v1478_v50 = vadd.f32 %v1477_v28, %v3671_v5 }
 0x30e   : > { %v1408_v25 = vpop.f32.mrf.mxu0 }
 0x30f   : > { %v1432_v60 = vpop.f32.mrf.mxu1  ;;  %1518 = vst.msk [vmem:[%s2783_s30 + $0x88] sm:$0xff] %vm1291_vm5, %v1457_v8  ;;  %v1409_v22 = vadd.f32 %v1408_v25, %v3671_v5 }
 0x310   : > { %v1433_v29 = vadd.f32 %v1432_v60, %v3671_v5  ;;  %1525 = vst.msk [vmem:[%s2783_s30 + $0xc0] sm:$0xff] %vm1291_vm5, %v1478_v50 }
 0x311   : > { %1502 = vst.msk [vmem:[%s2783_s30 + $0x8] sm:$0xff] %vm1291_vm5, %v1409_v22 }
 0x312   : > { %1510 = vst.msk [vmem:[%s2783_s30 + $0x48] sm:$0xff] %vm1291_vm5, %v1433_v29 }
 0x314   : > { %v1480_v3 = vpop.f32.mrf.mxu3 }
 0x315   : > { %v1459_v43 = vpop.f32.mrf.mxu2  ;;  %v1481_v62 = vadd.f32 %v1480_v3, %v3671_v5 }
 0x316   : > { %v1460_v20 = vadd.f32 %v1459_v43, %v3671_v5 }
 0x317   : > { %v1411_v56 = vpop.f32.mrf.mxu0  ;;  %v1435_v34 = vpop.f32.mrf.mxu1  ;;  %1526 = vst.msk [vmem:[%s2783_s30 + $0xc8] sm:$0xff] %vm1291_vm5, %v1481_v62 }
 0x318   : > { %v1412_v16 = vadd.f32 %v1411_v56, %v3671_v5  ;;  %v1436_v31 = vadd.f32 %v1435_v34, %v3671_v5  ;;  %1519 = vst.msk [vmem:[%s2783_s30 + $0x90] sm:$0xff] %vm1291_vm5, %v1460_v20 }
 0x31a   : > { %1503 = vst.msk [vmem:[%s2783_s30 + $0x10] sm:$0xff] %vm1291_vm5, %v1412_v16 }
 0x31b   : > { %1511 = vst.msk [vmem:[%s2783_s30 + $0x50] sm:$0xff] %vm1291_vm5, %v1436_v31 }
 0x31c   : > { %v1483_v15 = vpop.f32.mrf.mxu3 }
 0x31d   : > { %v1484_v46 = vadd.f32 %v1483_v15, %v3671_v5 }
 0x31f   : > { %v1414_v6 = vpop.f32.mrf.mxu0  ;;  %1527 = vst.msk [vmem:[%s2783_s30 + $0xd0] sm:$0xff] %vm1291_vm5, %v1484_v46 }
 0x320   : > { %v1415_v61 = vadd.f32 %v1414_v6, %v3671_v5 }
 0x322   : > { %1504 = vst.msk [vmem:[%s2783_s30 + $0x18] sm:$0xff] %vm1291_vm5, %v1415_v61 }
 0x324   : > { %v1462_v10 = vpop.f32.mrf.mxu2 }
 0x325   : > { %v1463_v1 = vadd.f32 %v1462_v10, %v3671_v5  ;;  %v1486_v7 = vpop.f32.mrf.mxu3 }
 0x326   : > { %v1487_v55 = vadd.f32 %v1486_v7, %v3671_v5  ;;  %v1438_v11 = vpop.f32.mrf.mxu1 }
 0x327   : > { %1520 = vst.msk [vmem:[%s2783_s30 + $0x98] sm:$0xff] %vm1291_vm5, %v1463_v1  ;;  %v1439_v2 = vadd.f32 %v1438_v11, %v3671_v5 }
 0x328   : > { %1528 = vst.msk [vmem:[%s2783_s30 + $0xd8] sm:$0xff] %vm1291_vm5, %v1487_v55 }
 0x329   : > { %1512 = vst.msk [vmem:[%s2783_s30 + $0x58] sm:$0xff] %vm1291_vm5, %v1439_v2 }
 0x32d   : > { %v1465_v30 = vpop.f32.mrf.mxu2  ;;  %v1489_v36 = vpop.f32.mrf.mxu3 }
 0x32e   : > { %v1466_v4 = vadd.f32 %v1465_v30, %v3671_v5  ;;  %v1417_v14 = vpop.f32.mrf.mxu0  ;;  %v1490_v21 = vadd.f32 %v1489_v36, %v3671_v5 }
 0x32f   : > { %v1441_v18 = vpop.f32.mrf.mxu1  ;;  %v1418_v12 = vadd.f32 %v1417_v14, %v3671_v5 }
 0x330   : > { %1521 = vst.msk [vmem:[%s2783_s30 + $0xa0] sm:$0xff] %vm1291_vm5, %v1466_v4  ;;  %v1442_v52 = vadd.f32 %v1441_v18, %v3671_v5 }
 0x331   : > { %1529 = vst.msk [vmem:[%s2783_s30 + $0xe0] sm:$0xff] %vm1291_vm5, %v1490_v21 }
 0x332   : > { %1505 = vst.msk [vmem:[%s2783_s30 + $0x20] sm:$0xff] %vm1291_vm5, %v1418_v12 }
 0x333   : > { %1513 = vst.msk [vmem:[%s2783_s30 + $0x60] sm:$0xff] %vm1291_vm5, %v1442_v52 }
 0x335   : > { %v1468_v40 = vpop.f32.mrf.mxu2 }
 0x336   : > { %v1469_v54 = vadd.f32 %v1468_v40, %v3671_v5 }
 0x337   : > { %v1420_v17 = vpop.f32.mrf.mxu0  ;;  %v1444_v59 = vpop.f32.mrf.mxu1 }
 0x338   : > { %v1421_v27 = vadd.f32 %v1420_v17, %v3671_v5  ;;  %1522 = vst.msk [vmem:[%s2783_s30 + $0xa8] sm:$0xff] %vm1291_vm5, %v1469_v54  ;;  %v1445_v32 = vadd.f32 %v1444_v59, %v3671_v5 }
 0x33a   : > { %1506 = vst.msk [vmem:[%s2783_s30 + $0x28] sm:$0xff] %vm1291_vm5, %v1421_v27 }
 0x33b   : > { %1514 = vst.msk [vmem:[%s2783_s30 + $0x68] sm:$0xff] %vm1291_vm5, %v1445_v32 }
 0x33c   : > { %v1492_v9 = vpop.f32.mrf.mxu3 }
 0x33d   : > { %v1493_v37 = vadd.f32 %v1492_v9, %v3671_v5 }
 0x33f   : > { %1530 = vst.msk [vmem:[%s2783_s30 + $0xe8] sm:$0xff] %vm1291_vm5, %v1493_v37  ;;  %v1423_v57 = vpop.f32.mrf.mxu0 }
 0x340   : > { %v1424_v35 = vadd.f32 %v1423_v57, %v3671_v5 }
 0x342   : > { %1507 = vst.msk [vmem:[%s2783_s30 + $0x30] sm:$0xff] %vm1291_vm5, %v1424_v35 }
 0x344   : > { %v1471_v41 = vpop.f32.mrf.mxu2 }
 0x345   : > { %v1495_v49 = vpop.f32.mrf.mxu3  ;;  %v1472_v48 = vadd.f32 %v1471_v41, %v3671_v5 }
 0x346   : > { %v1496_v53 = vadd.f32 %v1495_v49, %v3671_v5  ;;  %v1447_v58 = vpop.f32.mrf.mxu1 }
 0x347   : > { %1523 = vst.msk [vmem:[%s2783_s30 + $0xb0] sm:$0xff] %vm1291_vm5, %v1472_v48  ;;  %v1448_v26 = vadd.f32 %v1447_v58, %v3671_v5 }
 0x348   : > { %1531 = vst.msk [vmem:[%s2783_s30 + $0xf0] sm:$0xff] %vm1291_vm5, %v1496_v53 }
 0x349   : > { %1515 = vst.msk [vmem:[%s2783_s30 + $0x70] sm:$0xff] %vm1291_vm5, %v1448_v26 }
 0x34d   : > { %v1474_v51 = vpop.f32.mrf.mxu2  ;;  %v1498_v44 = vpop.f32.mrf.mxu3 }
 0x34e   : > { %v1475_v19 = vadd.f32 %v1474_v51, %v3671_v5  ;;  %v1426_v39 = vpop.f32.mrf.mxu0  ;;  %v1499_v13 = vadd.f32 %v1498_v44, %v3671_v5 }
 0x34f   : > { %v1450_v23 = vpop.f32.mrf.mxu1  ;;  %v1427_v45 = vadd.f32 %v1426_v39, %v3671_v5 }
 0x350   : > { %1524 = vst.msk [vmem:[%s2783_s30 + $0xb8] sm:$0xff] %vm1291_vm5, %v1475_v19  ;;  %v1451_v24 = vadd.f32 %v1450_v23, %v3671_v5 }
 0x351   : > { %1532 = vst.msk [vmem:[%s2783_s30 + $0xf8] sm:$0xff] %vm1291_vm5, %v1499_v13 }
 0x352   : > { %1508 = vst.msk [vmem:[%s2783_s30 + $0x38] sm:$0xff] %vm1291_vm5, %v1427_v45 }
 0x353   : > { %1516 = vst.msk [vmem:[%s2783_s30 + $0x78] sm:$0xff] %vm1291_vm5, %v1451_v24 }
 0x354 PF: > { %p2541_p9 = scmp.ne.s32.totalorder %s2694_s12, 2 }
 0x355   : > { %s2716_s20 = smov (!%p2541_p9), 4  }
 0x356   : > { %1536 = sbr.rel (%p2541_p9) target bundleno = 1187 (0x4a3), region = 44 }
 0x35b   : > { %v1585_v42 = vld [vmem:[%s2778_s26 + $0xc0] sm:$0xff]  ;;  %v1586_v47 = vld [vmem:[%s2778_s26 + $0xc8] sm:$0xff]  ;;  %v1587_v50 = vld [vmem:[%s2778_s26 + $0xd8] sm:$0xff]  ;;  %vm1729_vm6 = vcmask 31744   ;;  %vm1766_vm7 = vcmask 64512  }
 0x35c   : > { %v1569_v5 = vld [vmem:[%s2778_s26] sm:$0xff]  ;;  %1665 = vrot.lane.b32.xlu0 %v1585_v42, %s2716_s20  ;;  %1667 = vrot.lane.b32.xlu2 %v1586_v47, %s2716_s20  ;;  %v1594_v38 = vld [vmem:[%s2778_s26 + $0x128] sm:$0xff] }
 0x35d   : > { %1633 = vrot.lane.b32.xlu1 %v1569_v5, %s2716_s20  ;;  %v1593_v33 = vld [vmem:[%s2778_s26 + $0x120] sm:$0xff]  ;;  %v1570_v8 = vld [vmem:[%s2778_s26 + $0x8] sm:$0xff]  ;;  %v1595_v25 = vld [vmem:[%s2778_s26 + $0x138] sm:$0xff] }
 0x35e   : > { %v1577_v63 = vld [vmem:[%s2778_s26 + $0x60] sm:$0xff]  ;;  %v1578_v28 = vld [vmem:[%s2778_s26 + $0x68] sm:$0xff]  ;;  %v1571_v60 = vld [vmem:[%s2778_s26 + $0x18] sm:$0xff] }
 0x35f   : > { %v1579_v22 = vld [vmem:[%s2778_s26 + $0x78] sm:$0xff]  ;;  %v1588_v29 = vld [vmem:[%s2778_s26 + $0xe0] sm:$0xff]  ;;  %v1589_v56 = vld [vmem:[%s2778_s26 + $0xf0] sm:$0xff] }
 0x360   : > { %v1596_v3 = vld [vmem:[%s2778_s26 + $0x140] sm:$0xff]  ;;  %v1597_v20 = vld [vmem:[%s2778_s26 + $0x150] sm:$0xff]  ;;  %v1590_v31 = vld [vmem:[%s2778_s26 + $0xf8] sm:$0xff] }
 0x361   : > { %v1572_v43 = vld [vmem:[%s2778_s26 + $0x20] sm:$0xff]  ;;  %v1573_v34 = vld [vmem:[%s2778_s26 + $0x30] sm:$0xff]  ;;  %v1598_v15 = vld [vmem:[%s2778_s26 + $0x158] sm:$0xff] }
 0x362   : > { %v1580_v62 = vld [vmem:[%s2778_s26 + $0x80] sm:$0xff]  ;;  %v1581_v16 = vld [vmem:[%s2778_s26 + $0x90] sm:$0xff]  ;;  %v1574_v46 = vld [vmem:[%s2778_s26 + $0x38] sm:$0xff] }
 0x363   : > { %v1582_v6 = vld [vmem:[%s2778_s26 + $0x98] sm:$0xff]  ;;  %v1591_v61 = vld [vmem:[%s2778_s26 + $0x108] sm:$0xff]  ;;  %v1592_v55 = vld [vmem:[%s2778_s26 + $0x110] sm:$0xff] }
 0x364   : > { %1681 = vrot.lane.b32.xlu0 %v1593_v33, %s2716_s20  ;;  %1683 = vrot.lane.b32.xlu2 %v1594_v38, %s2716_s20  ;;  %v1599_v10 = vld [vmem:[%s2778_s26 + $0x168] sm:$0xff]  ;;  %v1600_v11 = vld [vmem:[%s2778_s26 + $0x170] sm:$0xff] }
 0x365   : > { %1649 = vrot.lane.b32.xlu1 %v1577_v63, %s2716_s20  ;;  %v1575_v1 = vld [vmem:[%s2778_s26 + $0x48] sm:$0xff]  ;;  %v1576_v2 = vld [vmem:[%s2778_s26 + $0x50] sm:$0xff]  ;;  %v1762_v4 = vld [vmem:[%s4215_s1 + $0x18] sm:$0xff] }
 0x366   : > { %v1583_v7 = vld [vmem:[%s2778_s26 + $0xa8] sm:$0xff]  ;;  %v1584_v30 = vld [vmem:[%s2778_s26 + $0xb0] sm:$0xff]  ;;  %1878 = vmatpush.msra.mxu0 %v1762_v4  ;;  %2621 = vmatpush.msra.mxu2 %v1762_v4  ;;  %v1555_v48 = vld [vmem:[%s2778_s26 + $0xd9] sm:$0xff] }
 0x367   : > { %2620 = vmatpush.msra.mxu1 %v1762_v4  ;;  %2622 = vmatpush.msra.mxu3 %v1762_v4  ;;  %v1537_v18 = vld [vmem:[%s2778_s26 + $0x1] sm:$0xff]  ;;  %v1554_v59 = vld [vmem:[%s2778_s26 + $0xc9] sm:$0xff]  ;;  %v1547_v24 = vld [vmem:[%s2778_s26 + $0x79] sm:$0xff] }
 0x368   : > { %v1553_v21 = vld [vmem:[%s2778_s26 + $0xc1] sm:$0xff]  ;;  %v1538_v53 = vld [vmem:[%s2778_s26 + $0x9] sm:$0xff]  ;;  %v1539_v42 = vld [vmem:[%s2778_s26 + $0x19] sm:$0xff] }
 0x369   : > { %v1545_v27 = vld [vmem:[%s2778_s26 + $0x61] sm:$0xff]  ;;  %v1546_v58 = vld [vmem:[%s2778_s26 + $0x69] sm:$0xff]  ;;  %v1563_v5 = vld [vmem:[%s2778_s26 + $0x139] sm:$0xff] }
 0x36a   : > { %v1561_v32 = vld [vmem:[%s2778_s26 + $0x121] sm:$0xff]  ;;  %v1562_v26 = vld [vmem:[%s2778_s26 + $0x129] sm:$0xff] }
 0x36c   : > { %1635 = vrot.lane.b32.xlu0 %v1570_v8, %s2716_s20  ;;  %1669 = vrot.lane.b32.xlu2 %v1587_v50, %s2716_s20 }
 0x36d   : > { %1651 = vrot.lane.b32.xlu1 %v1578_v28, %s2716_s20  ;;  %v1540_v28 = vld [vmem:[%s2778_s26 + $0x21] sm:$0xff] }
 0x374   : > { %1685 = vrot.lane.b32.xlu0 %v1595_v25, %s2716_s20  ;;  %1653 = vrot.lane.b32.xlu2 %v1579_v22, %s2716_s20  ;;  %v1556_v25 = vld [vmem:[%s2778_s26 + $0xe1] sm:$0xff] }
 0x375   : > { %1637 = vrot.lane.b32.xlu1 %v1571_v60, %s2716_s20  ;;  %v1564_v60 = vld [vmem:[%s2778_s26 + $0x141] sm:$0xff] }
 0x37c   : > { %1671 = vrot.lane.b32.xlu0 %v1588_v29, %s2716_s20  ;;  %1639 = vrot.lane.b32.xlu2 %v1572_v43, %s2716_s20 }
 0x37d   : > { %1687 = vrot.lane.b32.xlu1 %v1596_v3, %s2716_s20 }
 0x384   : > { %1655 = vrot.lane.b32.xlu0 %v1580_v62, %s2716_s20  ;;  %1689 = vrot.lane.b32.xlu2 %v1597_v20, %s2716_s20  ;;  %v1548_v20 = vld [vmem:[%s2778_s26 + $0x81] sm:$0xff] }
 0x385   : > { %1673 = vrot.lane.b32.xlu1 %v1589_v56, %s2716_s20  ;;  %v1565_v56 = vld [vmem:[%s2778_s26 + $0x151] sm:$0xff] }
 0x38c   : > { %1641 = vrot.lane.b32.xlu0 %v1573_v34, %s2716_s20  ;;  %1675 = vrot.lane.b32.xlu2 %v1590_v31, %s2716_s20  ;;  %v1557_v34 = vld [vmem:[%s2778_s26 + $0xf1] sm:$0xff] }
 0x38d   : > { %1657 = vrot.lane.b32.xlu1 %v1581_v16, %s2716_s20 }
 0x394   : > { %1691 = vrot.lane.b32.xlu0 %v1598_v15, %s2716_s20  ;;  %1659 = vrot.lane.b32.xlu2 %v1582_v6, %s2716_s20 }
 0x395   : > { %1643 = vrot.lane.b32.xlu1 %v1574_v46, %s2716_s20 }
 0x39c   : > { %1677 = vrot.lane.b32.xlu0 %v1591_v61, %s2716_s20  ;;  %1645 = vrot.lane.b32.xlu2 %v1575_v1, %s2716_s20  ;;  %v1541_v1 = vld [vmem:[%s2778_s26 + $0x31] sm:$0xff] }
 0x39d   : > { %1693 = vrot.lane.b32.xlu1 %v1599_v10, %s2716_s20  ;;  %v1558_v10 = vld [vmem:[%s2778_s26 + $0xf9] sm:$0xff] }
 0x3a4   : > { %1661 = vrot.lane.b32.xlu0 %v1583_v7, %s2716_s20  ;;  %1695 = vrot.lane.b32.xlu2 %v1600_v11, %s2716_s20  ;;  %v1549_v7 = vld [vmem:[%s2778_s26 + $0x91] sm:$0xff] }
 0x3a5   : > { %1679 = vrot.lane.b32.xlu1 %v1592_v55, %s2716_s20 }
 0x3ac   : > { %1647 = vrot.lane.b32.xlu0 %v1576_v2, %s2716_s20 }
 0x3ad   : > { %1663 = vrot.lane.b32.xlu1 %v1584_v30, %s2716_s20 }
 0x3b6   : > { %v1668_v36 = vpop.permute.xlu2 %1667 }
 0x3b7   : > { %v1747_v35 = vsel %vm1729_vm6, %v1554_v59, %v1668_v36  ;;  %v1543_v59 = vld [vmem:[%s2778_s26 + $0x49] sm:$0xff] }
 0x3be   : > { %v1684_v14 = vpop.permute.xlu2 %1683 }
 0x3bf   : > { %v1755_v13 = vsel %vm1729_vm6, %v1562_v26, %v1684_v14  ;;  %v1550_v14 = vld [vmem:[%s2778_s26 + $0x99] sm:$0xff]  ;;  %v1560_v26 = vld [vmem:[%s2778_s26 + $0x111] sm:$0xff] }
 0x3c6   : > { %v1670_v12 = vpop.permute.xlu2 %1669 }
 0x3c7   : > { %v1748_v44 = vsel %vm1729_vm6, %v1555_v48, %v1670_v12 }
 0x3ce   : > { %v1666_v52 = vpop.permute.xlu0 %1665  ;;  %v1654_v49 = vpop.permute.xlu2 %1653 }
 0x3cf   : > { %v1634_v40 = vpop.permute.xlu1 %1633  ;;  %v1746_v54 = vsel %vm1729_vm6, %v1553_v21, %v1666_v52  ;;  %v1740_v47 = vsel %vm1729_vm6, %v1547_v24, %v1654_v49  ;;  %v1566_v21 = vld [vmem:[%s2778_s26 + $0x159] sm:$0xff] }
 0x3d0   : > { %v1730_v17 = vsel %vm1729_vm6, %v1537_v18, %v1634_v40  ;;  %2558 = vmatmul.msk.f32.vlgmr.msra.gmra.mxu2 %vm1766_vm7, %v1746_v54  ;;  %v1542_v18 = vld [vmem:[%s2778_s26 + $0x39] sm:$0xff] }
 0x3d1   : > { %2542 = vmatmul.msk.f32.vlgmr.msra.gmra.mxu0 %vm1766_vm7, %v1730_v17 }
 0x3d6   : > { %v1682_v9 = vpop.permute.xlu0 %1681  ;;  %v1640_v45 = vpop.permute.xlu2 %1639 }
 0x3d7   : > { %v1650_v37 = vpop.permute.xlu1 %1649  ;;  %v1754_v41 = vsel %vm1729_vm6, %v1561_v32, %v1682_v9  ;;  %v1733_v22 = vsel %vm1729_vm6, %v1540_v28, %v1640_v45  ;;  %v1559_v32 = vld [vmem:[%s2778_s26 + $0x109] sm:$0xff]  ;;  %v1552_v45 = vld [vmem:[%s2778_s26 + $0xb1] sm:$0xff] }
 0x3d8   : > { %v1738_v57 = vsel %vm1729_vm6, %v1545_v27, %v1650_v37  ;;  %2559 = vmatmul.msk.f32.gmra.mxu2 %vm1766_vm7, %v1747_v35  ;;  %2566 = vmatmul.msk.f32.vlgmr.msra.gmra.mxu3 %vm1766_vm7, %v1754_v41  ;;  %v1567_v9 = vld [vmem:[%s2778_s26 + $0x169] sm:$0xff] }
 0x3d9   : > { %2550 = vmatmul.msk.f32.vlgmr.msra.gmra.mxu1 %vm1766_vm7, %v1738_v57 }
 0x3de   : > { %v1636_v51 = vpop.permute.xlu0 %1635  ;;  %v1690_v50 = vpop.permute.xlu2 %1689 }
 0x3df   : > { %v1652_v19 = vpop.permute.xlu1 %1651  ;;  %v1731_v39 = vsel %vm1729_vm6, %v1538_v53, %v1636_v51  ;;  %v1758_v46 = vsel %vm1729_vm6, %v1565_v56, %v1690_v50  ;;  %v1568_v53 = vld [vmem:[%s2778_s26 + $0x171] sm:$0xff] }
 0x3e0   : > { %v1739_v23 = vsel %vm1729_vm6, %v1546_v58, %v1652_v19  ;;  %2543 = vmatmul.msk.f32.gmra.mxu0 %vm1766_vm7, %v1731_v39  ;;  %2567 = vmatmul.msk.f32.gmra.mxu3 %vm1766_vm7, %v1755_v13  ;;  %v1551_v58 = vld [vmem:[%s2778_s26 + $0xa9] sm:$0xff]  ;;  %v1544_v13 = vld [vmem:[%s2778_s26 + $0x51] sm:$0xff] }
 0x3e1   : > { %2551 = vmatmul.msk.f32.gmra.mxu1 %vm1766_vm7, %v1739_v23  ;;  %2560 = vmatmul.msk.f32.gmra.mxu2 %vm1766_vm7, %v1748_v44 }
 0x3e6   : > { %v1686_v33 = vpop.permute.xlu0 %1685  ;;  %v1676_v16 = vpop.permute.xlu2 %1675 }
 0x3e7   : > { %v1638_v63 = vpop.permute.xlu1 %1637  ;;  %v1756_v8 = vsel %vm1729_vm6, %v1563_v5, %v1686_v33  ;;  %v1751_v2 = vsel %vm1729_vm6, %v1558_v10, %v1676_v16  ;;  %v3934_v33 = vperm.slane %v2772_v0, 0 }
 0x3e8   : > { %v1732_v38 = vsel %vm1729_vm6, %v1539_v42, %v1638_v63  ;;  %2568 = vmatmul.msk.f32.gmra.mxu3 %vm1766_vm7, %v1756_v8 }
 0x3e9   : > { %2544 = vmatmul.msk.f32.gmra.mxu0 %vm1766_vm7, %v1732_v38  ;;  %2552 = vmatmul.msk.f32.gmra.mxu1 %vm1766_vm7, %v1740_v47 }
 0x3ee   : > { %v1672_v29 = vpop.permute.xlu0 %1671  ;;  %v1660_v36 = vpop.permute.xlu2 %1659 }
 0x3ef   : > { %v1688_v3 = vpop.permute.xlu1 %1687  ;;  %v1749_v43 = vsel %vm1729_vm6, %v1556_v25, %v1672_v29  ;;  %v1743_v40 = vsel %vm1729_vm6, %v1550_v14, %v1660_v36 }
 0x3f0   : > { %v1757_v62 = vsel %vm1729_vm6, %v1564_v60, %v1688_v3  ;;  %2561 = vmatmul.msk.f32.gmra.mxu2 %vm1766_vm7, %v1749_v43 }
 0x3f1   : > { %2545 = vmatmul.msk.f32.gmra.mxu0 %vm1766_vm7, %v1733_v22  ;;  %2569 = vmatmul.msk.f32.gmra.mxu3 %vm1766_vm7, %v1757_v62 }
 0x3f6   : > { %v1656_v31 = vpop.permute.xlu0 %1655  ;;  %v1646_v27 = vpop.permute.xlu2 %1645 }
 0x3f7   : > { %v1674_v15 = vpop.permute.xlu1 %1673  ;;  %v1741_v6 = vsel %vm1729_vm6, %v1548_v20, %v1656_v31  ;;  %v1736_v35 = vsel %vm1729_vm6, %v1543_v59, %v1646_v27 }
 0x3f8   : > { %v1750_v61 = vsel %vm1729_vm6, %v1557_v34, %v1674_v15  ;;  %2553 = vmatmul.msk.f32.gmra.mxu1 %vm1766_vm7, %v1741_v6 }
 0x3f9   : > { %2562 = vmatmul.msk.f32.gmra.mxu2 %vm1766_vm7, %v1750_v61  ;;  %2570 = vmatmul.msk.f32.gmra.mxu3 %vm1766_vm7, %v1758_v46 }
 0x3fe   : > { %v1642_v55 = vpop.permute.xlu0 %1641  ;;  %v1696_v48 = vpop.permute.xlu2 %1695 }
 0x3ff   : > { %v1658_v11 = vpop.permute.xlu1 %1657  ;;  %v1734_v30 = vsel %vm1729_vm6, %v1541_v1, %v1642_v55  ;;  %v1761_v44 = vsel %vm1729_vm6, %v1568_v53, %v1696_v48 }
 0x400   : > { %v1742_v4 = vsel %vm1729_vm6, %v1549_v7, %v1658_v11  ;;  %2546 = vmatmul.msk.f32.gmra.mxu0 %vm1766_vm7, %v1734_v30 }
 0x401   : > { %2554 = vmatmul.msk.f32.gmra.mxu1 %vm1766_vm7, %v1742_v4  ;;  %2563 = vmatmul.msk.f32.gmra.mxu2 %vm1766_vm7, %v1751_v2 }
 0x406   : > { %v1692_v12 = vpop.permute.xlu0 %1691 }
 0x407   : > { %v1644_v52 = vpop.permute.xlu1 %1643  ;;  %v1759_v54 = vsel %vm1729_vm6, %v1566_v21, %v1692_v12 }
 0x408   : > { %v1735_v17 = vsel %vm1729_vm6, %v1542_v18, %v1644_v52  ;;  %2571 = vmatmul.msk.f32.gmra.mxu3 %vm1766_vm7, %v1759_v54 }
 0x409   : > { %2547 = vmatmul.msk.f32.gmra.mxu0 %vm1766_vm7, %v1735_v17  ;;  %2555 = vmatmul.msk.f32.gmra.mxu1 %vm1766_vm7, %v1743_v40 }
 0x40e   : > { %v1678_v37 = vpop.permute.xlu0 %1677 }
 0x40f   : > { %v1694_v57 = vpop.permute.xlu1 %1693  ;;  %v1752_v41 = vsel %vm1729_vm6, %v1559_v32, %v1678_v37 }
 0x410   : > { %v1760_v49 = vsel %vm1729_vm6, %v1567_v9, %v1694_v57  ;;  %2564 = vmatmul.msk.f32.gmra.mxu2 %vm1766_vm7, %v1752_v41 }
 0x411   : > { %2572 = vmatmul.msk.f32.gmra.mxu3 %vm1766_vm7, %v1760_v49  ;;  %2548 = vmatmul.msk.f32.gmra.mxu0 %vm1766_vm7, %v1736_v35 }
 0x416   : > { %v1662_v51 = vpop.permute.xlu0 %1661 }
 0x417   : > { %v1680_v19 = vpop.permute.xlu1 %1679  ;;  %v1744_v39 = vsel %vm1729_vm6, %v1551_v58, %v1662_v51 }
 0x418   : > { %v1753_v23 = vsel %vm1729_vm6, %v1560_v26, %v1680_v19  ;;  %2556 = vmatmul.msk.f32.gmra.mxu1 %vm1766_vm7, %v1744_v39 }
 0x419   : > { %2565 = vmatmul.msk.f32.gmra.mxu2 %vm1766_vm7, %v1753_v23  ;;  %2573 = vmatmul.msk.f32.gmra.mxu3 %vm1766_vm7, %v1761_v44 }
 0x41e   : > { %v1648_v24 = vpop.permute.xlu0 %1647 }
 0x41f   : > { %v1664_v42 = vpop.permute.xlu1 %1663  ;;  %v1737_v5 = vsel %vm1729_vm6, %v1544_v13, %v1648_v24 }
 0x420   : > { %v1745_v47 = vsel %vm1729_vm6, %v1552_v45, %v1664_v42  ;;  %2549 = vmatmul.msk.f32.gmra.mxu0 %vm1766_vm7, %v1737_v5 }
 0x421   : > { %2557 = vmatmul.msk.f32.gmra.mxu1 %vm1766_vm7, %v1745_v47 }
 0x44e   : > { %v1880_v63 = vpop.f32.mrf.mxu0 }
 0x44f   : > { %v1881_v38 = vadd.f32 %v1880_v63, %v3934_v33 }
 0x451   : > { %1976 = vst.msk [vmem:[%s2783_s30] sm:$0xff] %vm1766_vm7, %v1881_v38 }
 0x453   : > { %v1928_v8 = vpop.f32.mrf.mxu2 }
 0x454   : > { %v1929_v28 = vadd.f32 %v1928_v8, %v3934_v33 }
 0x456   : > { %v1904_v50 = vpop.f32.mrf.mxu1  ;;  %1992 = vst.msk [vmem:[%s2783_s30 + $0x80] sm:$0xff] %vm1766_vm7, %v1929_v28 }
 0x457   : > { %v1905_v25 = vadd.f32 %v1904_v50, %v3934_v33 }
 0x459   : > { %1984 = vst.msk [vmem:[%s2783_s30 + $0x40] sm:$0xff] %vm1766_vm7, %v1905_v25 }
 0x45b   : > { %v1931_v60 = vpop.f32.mrf.mxu2  ;;  %v1952_v29 = vpop.f32.mrf.mxu3 }
 0x45c   : > { %v1932_v22 = vadd.f32 %v1931_v60, %v3934_v33  ;;  %v1953_v3 = vadd.f32 %v1952_v29, %v3934_v33 }
 0x45d   : > { %v1883_v43 = vpop.f32.mrf.mxu0 }
 0x45e   : > { %v1907_v62 = vpop.f32.mrf.mxu1  ;;  %1993 = vst.msk [vmem:[%s2783_s30 + $0x88] sm:$0xff] %vm1766_vm7, %v1932_v22  ;;  %v1884_v56 = vadd.f32 %v1883_v43, %v3934_v33 }
 0x45f   : > { %v1908_v20 = vadd.f32 %v1907_v62, %v3934_v33  ;;  %2000 = vst.msk [vmem:[%s2783_s30 + $0xc0] sm:$0xff] %vm1766_vm7, %v1953_v3 }
 0x460   : > { %1977 = vst.msk [vmem:[%s2783_s30 + $0x8] sm:$0xff] %vm1766_vm7, %v1884_v56 }
 0x461   : > { %1985 = vst.msk [vmem:[%s2783_s30 + $0x48] sm:$0xff] %vm1766_vm7, %v1908_v20 }
 0x463   : > { %v1955_v34 = vpop.f32.mrf.mxu3 }
 0x464   : > { %v1934_v16 = vpop.f32.mrf.mxu2  ;;  %v1956_v31 = vadd.f32 %v1955_v34, %v3934_v33 }
 0x465   : > { %v1935_v46 = vadd.f32 %v1934_v16, %v3934_v33 }
 0x466   : > { %v1886_v15 = vpop.f32.mrf.mxu0  ;;  %v1910_v6 = vpop.f32.mrf.mxu1  ;;  %2001 = vst.msk [vmem:[%s2783_s30 + $0xc8] sm:$0xff] %vm1766_vm7, %v1956_v31 }
 0x467   : > { %v1887_v61 = vadd.f32 %v1886_v15, %v3934_v33  ;;  %v1911_v10 = vadd.f32 %v1910_v6, %v3934_v33  ;;  %1994 = vst.msk [vmem:[%s2783_s30 + $0x90] sm:$0xff] %vm1766_vm7, %v1935_v46 }
 0x469   : > { %1978 = vst.msk [vmem:[%s2783_s30 + $0x10] sm:$0xff] %vm1766_vm7, %v1887_v61 }
 0x46a   : > { %1986 = vst.msk [vmem:[%s2783_s30 + $0x50] sm:$0xff] %vm1766_vm7, %v1911_v10 }
 0x46b   : > { %v1958_v1 = vpop.f32.mrf.mxu3 }
 0x46c   : > { %v1959_v7 = vadd.f32 %v1958_v1, %v3934_v33 }
 0x46e   : > { %v1889_v55 = vpop.f32.mrf.mxu0  ;;  %2002 = vst.msk [vmem:[%s2783_s30 + $0xd0] sm:$0xff] %vm1766_vm7, %v1959_v7 }
 0x46f   : > { %v1890_v11 = vadd.f32 %v1889_v55, %v3934_v33 }
 0x471   : > { %1979 = vst.msk [vmem:[%s2783_s30 + $0x18] sm:$0xff] %vm1766_vm7, %v1890_v11 }
 0x473   : > { %v1937_v2 = vpop.f32.mrf.mxu2 }
 0x474   : > { %v1938_v30 = vadd.f32 %v1937_v2, %v3934_v33  ;;  %v1961_v4 = vpop.f32.mrf.mxu3 }
 0x475   : > { %v1962_v36 = vadd.f32 %v1961_v4, %v3934_v33  ;;  %v1913_v14 = vpop.f32.mrf.mxu1 }
 0x476   : > { %1995 = vst.msk [vmem:[%s2783_s30 + $0x98] sm:$0xff] %vm1766_vm7, %v1938_v30  ;;  %v1914_v18 = vadd.f32 %v1913_v14, %v3934_v33 }
 0x477   : > { %2003 = vst.msk [vmem:[%s2783_s30 + $0xd8] sm:$0xff] %vm1766_vm7, %v1962_v36 }
 0x478   : > { %1987 = vst.msk [vmem:[%s2783_s30 + $0x58] sm:$0xff] %vm1766_vm7, %v1914_v18 }
 0x47c   : > { %v1940_v21 = vpop.f32.mrf.mxu2  ;;  %v1964_v52 = vpop.f32.mrf.mxu3 }
 0x47d   : > { %v1941_v12 = vadd.f32 %v1940_v21, %v3934_v33  ;;  %v1892_v40 = vpop.f32.mrf.mxu0  ;;  %v1965_v54 = vadd.f32 %v1964_v52, %v3934_v33 }
 0x47e   : > { %v1916_v17 = vpop.f32.mrf.mxu1  ;;  %v1893_v27 = vadd.f32 %v1892_v40, %v3934_v33 }
 0x47f   : > { %1996 = vst.msk [vmem:[%s2783_s30 + $0xa0] sm:$0xff] %vm1766_vm7, %v1941_v12  ;;  %v1917_v59 = vadd.f32 %v1916_v17, %v3934_v33 }
 0x480   : > { %2004 = vst.msk [vmem:[%s2783_s30 + $0xe0] sm:$0xff] %vm1766_vm7, %v1965_v54 }
 0x481   : > { %1980 = vst.msk [vmem:[%s2783_s30 + $0x20] sm:$0xff] %vm1766_vm7, %v1893_v27 }
 0x482   : > { %1988 = vst.msk [vmem:[%s2783_s30 + $0x60] sm:$0xff] %vm1766_vm7, %v1917_v59 }
 0x484   : > { %v1943_v32 = vpop.f32.mrf.mxu2 }
 0x485   : > { %v1944_v37 = vadd.f32 %v1943_v32, %v3934_v33 }
 0x486   : > { %v1895_v9 = vpop.f32.mrf.mxu0  ;;  %v1919_v35 = vpop.f32.mrf.mxu1 }
 0x487   : > { %v1896_v57 = vadd.f32 %v1895_v9, %v3934_v33  ;;  %1997 = vst.msk [vmem:[%s2783_s30 + $0xa8] sm:$0xff] %vm1766_vm7, %v1944_v37  ;;  %v1920_v41 = vadd.f32 %v1919_v35, %v3934_v33 }
 0x489   : > { %1981 = vst.msk [vmem:[%s2783_s30 + $0x28] sm:$0xff] %vm1766_vm7, %v1896_v57 }
 0x48a   : > { %1989 = vst.msk [vmem:[%s2783_s30 + $0x68] sm:$0xff] %vm1766_vm7, %v1920_v41 }
 0x48b   : > { %v1967_v49 = vpop.f32.mrf.mxu3 }
 0x48c   : > { %v1968_v48 = vadd.f32 %v1967_v49, %v3934_v33 }
 0x48e   : > { %2005 = vst.msk [vmem:[%s2783_s30 + $0xe8] sm:$0xff] %vm1766_vm7, %v1968_v48  ;;  %v1898_v53 = vpop.f32.mrf.mxu0 }
 0x48f   : > { %v1899_v58 = vadd.f32 %v1898_v53, %v3934_v33 }
 0x491   : > { %1982 = vst.msk [vmem:[%s2783_s30 + $0x30] sm:$0xff] %vm1766_vm7, %v1899_v58 }
 0x493   : > { %v1946_v26 = vpop.f32.mrf.mxu2 }
 0x494   : > { %v1970_v51 = vpop.f32.mrf.mxu3  ;;  %v1947_v19 = vadd.f32 %v1946_v26, %v3934_v33 }
 0x495   : > { %v1971_v44 = vadd.f32 %v1970_v51, %v3934_v33  ;;  %v1922_v39 = vpop.f32.mrf.mxu1 }
 0x496   : > { %1998 = vst.msk [vmem:[%s2783_s30 + $0xb0] sm:$0xff] %vm1766_vm7, %v1947_v19  ;;  %v1923_v23 = vadd.f32 %v1922_v39, %v3934_v33 }
 0x497   : > { %2006 = vst.msk [vmem:[%s2783_s30 + $0xf0] sm:$0xff] %vm1766_vm7, %v1971_v44 }
 0x498   : > { %1990 = vst.msk [vmem:[%s2783_s30 + $0x70] sm:$0xff] %vm1766_vm7, %v1923_v23 }
 0x49c   : > { %v1949_v13 = vpop.f32.mrf.mxu2  ;;  %v1973_v24 = vpop.f32.mrf.mxu3 }
 0x49d   : > { %v1950_v45 = vadd.f32 %v1949_v13, %v3934_v33  ;;  %v1901_v42 = vpop.f32.mrf.mxu0  ;;  %v1974_v47 = vadd.f32 %v1973_v24, %v3934_v33 }
 0x49e   : > { %v1925_v5 = vpop.f32.mrf.mxu1  ;;  %v1902_v63 = vadd.f32 %v1901_v42, %v3934_v33 }
 0x49f   : > { %1999 = vst.msk [vmem:[%s2783_s30 + $0xb8] sm:$0xff] %vm1766_vm7, %v1950_v45  ;;  %v1926_v38 = vadd.f32 %v1925_v5, %v3934_v33 }
 0x4a0   : > { %2007 = vst.msk [vmem:[%s2783_s30 + $0xf8] sm:$0xff] %vm1766_vm7, %v1974_v47 }
 0x4a1   : > { %1983 = vst.msk [vmem:[%s2783_s30 + $0x38] sm:$0xff] %vm1766_vm7, %v1902_v63 }
 0x4a2   : > { %1991 = vst.msk [vmem:[%s2783_s30 + $0x78] sm:$0xff] %vm1766_vm7, %v1926_v38 }
 0x4a3 PF: > { %p2574_p10 = scmp.ne.s32.totalorder %s2694_s12, 3 }
 0x4a5   : > { %2011 = sbr.rel (%p2574_p10) target bundleno = 1388 (0x56c), region = 48 }
 0x4aa   : > { %v2044_v8 = vld [vmem:[%s4215_s1 + $0x20] sm:$0xf]  ;;  %vm2145_vm8 = vcmask 1043456   ;;  %vm2048_vm9 = vcmask 31744   ;;  %v2029_v60 = vld [vmem:[%s2778_s26 + $0xc8] sm:$0xff]  ;;  %v2030_v43 = vld [vmem:[%s2778_s26 + $0xd8] sm:$0xff] }
 0x4ab   : > { %v2028_v33 = vld [vmem:[%s2778_s26 + $0xc0] sm:$0xff]  ;;  %2624 = vmatpush.msk.msra.mxu2 %vm2145_vm8, %v2044_v8  ;;  %2625 = vmatpush.msk.msra.mxu3 %vm2145_vm8, %v2044_v8  ;;  %v2037_v22 = vld [vmem:[%s2778_s26 + $0x128] sm:$0xff]  ;;  %v2038_v62 = vld [vmem:[%s2778_s26 + $0x138] sm:$0xff]  ;;  %v4101_v52 = vperm.slane %v2772_v0, 0  ;;  %vm2262_vm10 = vcmask 64512  }
 0x4ac   : > { %v2036_v28 = vld [vmem:[%s2778_s26 + $0x120] sm:$0xff]  ;;  %2592 = vmatmul.msk.f32.vlgmr.msra.gmra.mxu2 %vm2048_vm9, %v2028_v33  ;;  %2575 = vmatpush.msk.msra.mxu0 %vm2145_vm8, %v2044_v8  ;;  %v2013_v29 = vld [vmem:[%s2778_s26 + $0x8] sm:$0xff]  ;;  %v2014_v56 = vld [vmem:[%s2778_s26 + $0x18] sm:$0xff] }
 0x4ad   : > { %v2012_v50 = vld [vmem:[%s2778_s26] sm:$0xff]  ;;  %2600 = vmatmul.msk.f32.vlgmr.msra.gmra.mxu3 %vm2048_vm9, %v2036_v28  ;;  %2623 = vmatpush.msk.msra.mxu1 %vm2145_vm8, %v2044_v8  ;;  %v2021_v3 = vld [vmem:[%s2778_s26 + $0x68] sm:$0xff]  ;;  %v2022_v20 = vld [vmem:[%s2778_s26 + $0x78] sm:$0xff] }
 0x4ae   : > { %v2020_v25 = vld [vmem:[%s2778_s26 + $0x60] sm:$0xff]  ;;  %2576 = vmatmul.msk.f32.vlgmr.msra.gmra.mxu0 %vm2048_vm9, %v2012_v50  ;;  %v2032_v46 = vld [vmem:[%s2778_s26 + $0xf0] sm:$0xff]  ;;  %v2033_v1 = vld [vmem:[%s2778_s26 + $0xf8] sm:$0xff] }
 0x4af   : > { %2584 = vmatmul.msk.f32.vlgmr.msra.gmra.mxu1 %vm2048_vm9, %v2020_v25  ;;  %v2031_v34 = vld [vmem:[%s2778_s26 + $0xe0] sm:$0xff]  ;;  %v2040_v6 = vld [vmem:[%s2778_s26 + $0x150] sm:$0xff]  ;;  %v2041_v7 = vld [vmem:[%s2778_s26 + $0x158] sm:$0xff] }
 0x4b0   : > { %v2039_v16 = vld [vmem:[%s2778_s26 + $0x140] sm:$0xff]  ;;  %v2016_v61 = vld [vmem:[%s2778_s26 + $0x30] sm:$0xff]  ;;  %v2017_v55 = vld [vmem:[%s2778_s26 + $0x38] sm:$0xff] }
 0x4b1   : > { %v2015_v31 = vld [vmem:[%s2778_s26 + $0x20] sm:$0xff]  ;;  %v2024_v10 = vld [vmem:[%s2778_s26 + $0x90] sm:$0xff]  ;;  %v2025_v11 = vld [vmem:[%s2778_s26 + $0x98] sm:$0xff] }
 0x4b2   : > { %v2023_v15 = vld [vmem:[%s2778_s26 + $0x80] sm:$0xff]  ;;  %v2034_v2 = vld [vmem:[%s2778_s26 + $0x108] sm:$0xff]  ;;  %v2035_v14 = vld [vmem:[%s2778_s26 + $0x110] sm:$0xff] }
 0x4b3   : > { %v2042_v30 = vld [vmem:[%s2778_s26 + $0x168] sm:$0xff]  ;;  %v2043_v18 = vld [vmem:[%s2778_s26 + $0x170] sm:$0xff] }
 0x4b4   : > { %2593 = vmatmul.msk.f32.gmra.mxu2 %vm2048_vm9, %v2029_v60  ;;  %v2018_v4 = vld [vmem:[%s2778_s26 + $0x48] sm:$0xff]  ;;  %v2019_v21 = vld [vmem:[%s2778_s26 + $0x50] sm:$0xff] }
 0x4b5   : > { %2601 = vmatmul.msk.f32.gmra.mxu3 %vm2048_vm9, %v2037_v22  ;;  %v2026_v36 = vld [vmem:[%s2778_s26 + $0xa8] sm:$0xff]  ;;  %v2027_v12 = vld [vmem:[%s2778_s26 + $0xb0] sm:$0xff] }
 0x4b6   : > { %2577 = vmatmul.msk.f32.gmra.mxu0 %vm2048_vm9, %v2013_v29 }
 0x4b7   : > { %2585 = vmatmul.msk.f32.gmra.mxu1 %vm2048_vm9, %v2021_v3 }
 0x4bc   : > { %2594 = vmatmul.msk.f32.gmra.mxu2 %vm2048_vm9, %v2030_v43 }
 0x4bd   : > { %2602 = vmatmul.msk.f32.gmra.mxu3 %vm2048_vm9, %v2038_v62 }
 0x4be   : > { %2578 = vmatmul.msk.f32.gmra.mxu0 %vm2048_vm9, %v2014_v56 }
 0x4bf   : > { %2586 = vmatmul.msk.f32.gmra.mxu1 %vm2048_vm9, %v2022_v20 }
 0x4c4   : > { %2595 = vmatmul.msk.f32.gmra.mxu2 %vm2048_vm9, %v2031_v34 }
 0x4c5   : > { %2603 = vmatmul.msk.f32.gmra.mxu3 %vm2048_vm9, %v2039_v16 }
 0x4c6   : > { %2579 = vmatmul.msk.f32.gmra.mxu0 %vm2048_vm9, %v2015_v31 }
 0x4c7   : > { %2587 = vmatmul.msk.f32.gmra.mxu1 %vm2048_vm9, %v2023_v15 }
 0x4cc   : > { %2596 = vmatmul.msk.f32.gmra.mxu2 %vm2048_vm9, %v2032_v46 }
 0x4cd   : > { %2604 = vmatmul.msk.f32.gmra.mxu3 %vm2048_vm9, %v2040_v6 }
 0x4ce   : > { %2580 = vmatmul.msk.f32.gmra.mxu0 %vm2048_vm9, %v2016_v61 }
 0x4cf   : > { %2588 = vmatmul.msk.f32.gmra.mxu1 %vm2048_vm9, %v2024_v10 }
 0x4d4   : > { %2597 = vmatmul.msk.f32.gmra.mxu2 %vm2048_vm9, %v2033_v1 }
 0x4d5   : > { %2605 = vmatmul.msk.f32.gmra.mxu3 %vm2048_vm9, %v2041_v7 }
 0x4d6   : > { %2581 = vmatmul.msk.f32.gmra.mxu0 %vm2048_vm9, %v2017_v55 }
 0x4d7   : > { %2589 = vmatmul.msk.f32.gmra.mxu1 %vm2048_vm9, %v2025_v11 }
 0x4dc   : > { %2598 = vmatmul.msk.f32.gmra.mxu2 %vm2048_vm9, %v2034_v2 }
 0x4dd   : > { %2606 = vmatmul.msk.f32.gmra.mxu3 %vm2048_vm9, %v2042_v30 }
 0x4de   : > { %2582 = vmatmul.msk.f32.gmra.mxu0 %vm2048_vm9, %v2018_v4 }
 0x4df   : > { %2590 = vmatmul.msk.f32.gmra.mxu1 %vm2048_vm9, %v2026_v36 }
 0x4e4   : > { %2599 = vmatmul.msk.f32.gmra.mxu2 %vm2048_vm9, %v2035_v14 }
 0x4e5   : > { %2607 = vmatmul.msk.f32.gmra.mxu3 %vm2048_vm9, %v2043_v18 }
 0x4e6   : > { %2583 = vmatmul.msk.f32.gmra.mxu0 %vm2048_vm9, %v2019_v21 }
 0x4e7   : > { %2591 = vmatmul.msk.f32.gmra.mxu1 %vm2048_vm9, %v2027_v12 }
 0x52b   : > { %v2166_v40 = vpop.f32.mrf.mxu0 }
 0x52c   : > { %v2190_v17 = vpop.f32.mrf.mxu1  ;;  %v2167_v54 = vadd.f32 %v2166_v40, %v4101_v52 }
 0x52d   : > { %v2191_v27 = vadd.f32 %v2190_v17, %v4101_v52 }
 0x52e   : > { %2263 = vst.msk [vmem:[%s2783_s30] sm:$0xff] %vm2262_vm10, %v2167_v54 }
 0x52f   : > { %2271 = vst.msk [vmem:[%s2783_s30 + $0x40] sm:$0xff] %vm2262_vm10, %v2191_v27  ;;  %v2214_v59 = vpop.f32.mrf.mxu2 }
 0x530   : > { %v2238_v32 = vpop.f32.mrf.mxu3  ;;  %v2215_v0 = vadd.f32 %v2214_v59, %v4101_v52 }
 0x531   : > { %v2239_v9 = vadd.f32 %v2238_v32, %v4101_v52 }
 0x532   : > { %2279 = vst.msk [vmem:[%s2783_s30 + $0x80] sm:$0xff] %vm2262_vm10, %v2215_v0 }
 0x533   : > { %2287 = vst.msk [vmem:[%s2783_s30 + $0xc0] sm:$0xff] %vm2262_vm10, %v2239_v9  ;;  %v2169_v37 = vpop.f32.mrf.mxu0 }
 0x534   : > { %v2193_v57 = vpop.f32.mrf.mxu1  ;;  %v2170_v35 = vadd.f32 %v2169_v37, %v4101_v52 }
 0x535   : > { %v2194_v41 = vadd.f32 %v2193_v57, %v4101_v52 }
 0x536   : > { %2264 = vst.msk [vmem:[%s2783_s30 + $0x8] sm:$0xff] %vm2262_vm10, %v2170_v35 }
 0x537   : > { %2272 = vst.msk [vmem:[%s2783_s30 + $0x48] sm:$0xff] %vm2262_vm10, %v2194_v41  ;;  %v2217_v49 = vpop.f32.mrf.mxu2 }
 0x538   : > { %v2241_v48 = vpop.f32.mrf.mxu3  ;;  %v2218_v53 = vadd.f32 %v2217_v49, %v4101_v52 }
 0x539   : > { %v2242_v58 = vadd.f32 %v2241_v48, %v4101_v52 }
 0x53a   : > { %2280 = vst.msk [vmem:[%s2783_s30 + $0x88] sm:$0xff] %vm2262_vm10, %v2218_v53 }
 0x53b   : > { %2288 = vst.msk [vmem:[%s2783_s30 + $0xc8] sm:$0xff] %vm2262_vm10, %v2242_v58  ;;  %v2172_v26 = vpop.f32.mrf.mxu0 }
 0x53c   : > { %v2196_v51 = vpop.f32.mrf.mxu1  ;;  %v2173_v19 = vadd.f32 %v2172_v26, %v4101_v52 }
 0x53d   : > { %v2197_v44 = vadd.f32 %v2196_v51, %v4101_v52 }
 0x53e   : > { %2265 = vst.msk [vmem:[%s2783_s30 + $0x10] sm:$0xff] %vm2262_vm10, %v2173_v19 }
 0x53f   : > { %2273 = vst.msk [vmem:[%s2783_s30 + $0x50] sm:$0xff] %vm2262_vm10, %v2197_v44  ;;  %v2220_v39 = vpop.f32.mrf.mxu2 }
 0x540   : > { %v2244_v23 = vpop.f32.mrf.mxu3  ;;  %v2221_v13 = vadd.f32 %v2220_v39, %v4101_v52 }
 0x541   : > { %v2245_v45 = vadd.f32 %v2244_v23, %v4101_v52 }
 0x542   : > { %2281 = vst.msk [vmem:[%s2783_s30 + $0x90] sm:$0xff] %vm2262_vm10, %v2221_v13 }
 0x543   : > { %2289 = vst.msk [vmem:[%s2783_s30 + $0xd0] sm:$0xff] %vm2262_vm10, %v2245_v45  ;;  %v2175_v24 = vpop.f32.mrf.mxu0 }
 0x544   : > { %v2199_v42 = vpop.f32.mrf.mxu1  ;;  %v2176_v5 = vadd.f32 %v2175_v24, %v4101_v52 }
 0x545   : > { %v2200_v47 = vadd.f32 %v2199_v42, %v4101_v52 }
 0x546   : > { %2266 = vst.msk [vmem:[%s2783_s30 + $0x18] sm:$0xff] %vm2262_vm10, %v2176_v5 }
 0x547   : > { %2274 = vst.msk [vmem:[%s2783_s30 + $0x58] sm:$0xff] %vm2262_vm10, %v2200_v47  ;;  %v2223_v63 = vpop.f32.mrf.mxu2 }
 0x548   : > { %v2247_v38 = vpop.f32.mrf.mxu3  ;;  %v2224_v8 = vadd.f32 %v2223_v63, %v4101_v52 }
 0x549   : > { %v2248_v33 = vadd.f32 %v2247_v38, %v4101_v52 }
 0x54a   : > { %2282 = vst.msk [vmem:[%s2783_s30 + $0x98] sm:$0xff] %vm2262_vm10, %v2224_v8 }
 0x54b   : > { %2290 = vst.msk [vmem:[%s2783_s30 + $0xd8] sm:$0xff] %vm2262_vm10, %v2248_v33  ;;  %v2178_v28 = vpop.f32.mrf.mxu0 }
 0x54c   : > { %v2202_v50 = vpop.f32.mrf.mxu1  ;;  %v2179_v25 = vadd.f32 %v2178_v28, %v4101_v52 }
 0x54d   : > { %v2203_v60 = vadd.f32 %v2202_v50, %v4101_v52 }
 0x54e   : > { %2267 = vst.msk [vmem:[%s2783_s30 + $0x20] sm:$0xff] %vm2262_vm10, %v2179_v25 }
 0x54f   : > { %2275 = vst.msk [vmem:[%s2783_s30 + $0x60] sm:$0xff] %vm2262_vm10, %v2203_v60  ;;  %v2226_v22 = vpop.f32.mrf.mxu2 }
 0x550   : > { %v2250_v29 = vpop.f32.mrf.mxu3  ;;  %v2227_v3 = vadd.f32 %v2226_v22, %v4101_v52 }
 0x551   : > { %v2251_v43 = vadd.f32 %v2250_v29, %v4101_v52 }
 0x552   : > { %2283 = vst.msk [vmem:[%s2783_s30 + $0xa0] sm:$0xff] %vm2262_vm10, %v2227_v3 }
 0x553   : > { %2291 = vst.msk [vmem:[%s2783_s30 + $0xe0] sm:$0xff] %vm2262_vm10, %v2251_v43  ;;  %v2181_v62 = vpop.f32.mrf.mxu0 }
 0x554   : > { %v2205_v56 = vpop.f32.mrf.mxu1  ;;  %v2182_v20 = vadd.f32 %v2181_v62, %v4101_v52 }
 0x555   : > { %v2206_v34 = vadd.f32 %v2205_v56, %v4101_v52 }
 0x556   : > { %2268 = vst.msk [vmem:[%s2783_s30 + $0x28] sm:$0xff] %vm2262_vm10, %v2182_v20 }
 0x557   : > { %2276 = vst.msk [vmem:[%s2783_s30 + $0x68] sm:$0xff] %vm2262_vm10, %v2206_v34  ;;  %v2229_v16 = vpop.f32.mrf.mxu2 }
 0x558   : > { %v2253_v31 = vpop.f32.mrf.mxu3  ;;  %v2230_v15 = vadd.f32 %v2229_v16, %v4101_v52 }
 0x559   : > { %v2254_v46 = vadd.f32 %v2253_v31, %v4101_v52 }
 0x55a   : > { %2284 = vst.msk [vmem:[%s2783_s30 + $0xa8] sm:$0xff] %vm2262_vm10, %v2230_v15 }
 0x55b   : > { %2292 = vst.msk [vmem:[%s2783_s30 + $0xe8] sm:$0xff] %vm2262_vm10, %v2254_v46  ;;  %v2184_v6 = vpop.f32.mrf.mxu0 }
 0x55c   : > { %v2208_v61 = vpop.f32.mrf.mxu1  ;;  %v2185_v10 = vadd.f32 %v2184_v6, %v4101_v52 }
 0x55d   : > { %v2209_v1 = vadd.f32 %v2208_v61, %v4101_v52 }
 0x55e   : > { %2269 = vst.msk [vmem:[%s2783_s30 + $0x30] sm:$0xff] %vm2262_vm10, %v2185_v10 }
 0x55f   : > { %2277 = vst.msk [vmem:[%s2783_s30 + $0x70] sm:$0xff] %vm2262_vm10, %v2209_v1  ;;  %v2232_v7 = vpop.f32.mrf.mxu2 }
 0x560   : > { %v2256_v55 = vpop.f32.mrf.mxu3  ;;  %v2233_v11 = vadd.f32 %v2232_v7, %v4101_v52 }
 0x561   : > { %v2257_v2 = vadd.f32 %v2256_v55, %v4101_v52 }
 0x562   : > { %2285 = vst.msk [vmem:[%s2783_s30 + $0xb0] sm:$0xff] %vm2262_vm10, %v2233_v11 }
 0x563   : > { %2293 = vst.msk [vmem:[%s2783_s30 + $0xf0] sm:$0xff] %vm2262_vm10, %v2257_v2  ;;  %v2187_v30 = vpop.f32.mrf.mxu0 }
 0x564   : > { %v2211_v4 = vpop.f32.mrf.mxu1  ;;  %v2188_v36 = vadd.f32 %v2187_v30, %v4101_v52 }
 0x565   : > { %v2212_v14 = vadd.f32 %v2211_v4, %v4101_v52 }
 0x566   : > { %2270 = vst.msk [vmem:[%s2783_s30 + $0x38] sm:$0xff] %vm2262_vm10, %v2188_v36 }
 0x567   : > { %2278 = vst.msk [vmem:[%s2783_s30 + $0x78] sm:$0xff] %vm2262_vm10, %v2212_v14  ;;  %v2235_v18 = vpop.f32.mrf.mxu2 }
 0x568   : > { %v2259_v21 = vpop.f32.mrf.mxu3  ;;  %v2236_v12 = vadd.f32 %v2235_v18, %v4101_v52 }
 0x569   : > { %v2260_v40 = vadd.f32 %v2259_v21, %v4101_v52 }
 0x56a   : > { %2286 = vst.msk [vmem:[%s2783_s30 + $0xb8] sm:$0xff] %vm2262_vm10, %v2236_v12 }
 0x56b   : > { %2294 = vst.msk [vmem:[%s2783_s30 + $0xf8] sm:$0xff] %vm2262_vm10, %v2260_v40 }
 0x56c PF: > { %s13_s16 = sadd.s32 1, %s2710_s16   ;;  %s4218_s12 = smov %s2702_s14 }
 0x56d   : > { %p10_p11 = scmp.ge.s32.totalorder %s13_s16, 10   ;;  %s4219_s13 = smov %s2706_s15 }
 0x56e   : > { %s4220_s14 = smov %s4223_s17  ;;  %s4221_s15 = smov %s4227_s18 }
 0x56f   :  { %12 = sbr.rel (!%p10_p11) target bundleno = 3 (0x3), region = 80 }

</bundles_post_ra>
